<compile_context>
chip_gen: v5e
topology: v5e:2x2
jax: 0.10.0
libtpu: 0.0.40
codegen_flags: <defaults>
</compile_context>

<pallas_src>
import jax
import jax.numpy as jnp
from jax import lax
from jax.experimental import pallas as pl
from jax.experimental.pallas import tpu as pltpu

import numpy as np


def _round_up(n, m):
    return ((n + m - 1) // m) * m


# ----------------------------------------------------------------------------
# Kernel
# ----------------------------------------------------------------------------
def _lstm_fc_kernel(x_ref, wih_ref, whh_ref, bias_ref, wfc_ref, bfc_ref,
                    out_ref):
    """One batch block: full LSTM recurrence + final Linear.

    x_ref    : (Bb, T)   f32  inputs, batch on sublanes, time on lanes
    wih_ref  : (1, 4H)   f32  W_ih^T (input_size == 1), g-block pre-scaled by 2
    whh_ref  : (H, 4H)   bf16 W_hh^T, g-block pre-scaled by 2
    bias_ref : (1, 4H)   f32  b_ih + b_hh, g-block pre-scaled by 2
    wfc_ref  : (1, H)    f32  fc.weight
    bfc_ref  : (1, 1)    f32  fc.bias
    out_ref  : (Bb, 1)   f32  fc(h_T)
    """
    Bb, T = x_ref.shape
    H = whh_ref.shape[0]

    # Hoisted once per batch block; whh stays resident across all timesteps.
    whh = whh_ref[...]                                   # (H, 4H) bf16
    wih = wih_ref[...]                                   # (1, 4H) f32
    bias = bias_ref[...]                                 # (1, 4H) f32
    x = x_ref[...]                                       # (Bb, T) f32
    lane_t = lax.broadcasted_iota(jnp.int32, (1, T), 1)  # time index on lanes

    def step(t, carry):
        h, c = carry                                     # (Bb, H) f32 each
        # Input projection (independent of h -> overlaps previous step's matmul
        # when unrolled).  x_t selected with an iota mask + lane reduce.
        x_t = jnp.sum(jnp.where(lane_t == t, x, 0.0), axis=1, keepdims=True)  # (Bb, 1)
        gx = x_t * wih + bias                            # (Bb, 4H) broadcast FMA
        # Recurrent matmul in bf16 (f32 accumulation) — the serial critical path.
        gates = gx + jnp.dot(h.astype(jnp.bfloat16), whh,
                             preferred_element_type=jnp.float32)
        s = jax.nn.sigmoid(gates)                        # ONE EUP pass over (Bb, 4H)
        i_g = s[:, 0 * H:1 * H]                          # PyTorch gate order i|f|g|o
        f_g = s[:, 1 * H:2 * H]
        g_g = 2.0 * s[:, 2 * H:3 * H] - 1.0              # == tanh(raw g); g cols pre-scaled by 2
        o_g = s[:, 3 * H:4 * H]
        c_new = f_g * c + i_g * g_g
        h_new = o_g * jnp.tanh(c_new)
        return h_new, c_new

    h0 = jnp.zeros((Bb, H), jnp.float32)
    c0 = jnp.zeros((Bb, H), jnp.float32)
    # Capped unroll: adjacent-iteration overlap without vreg-pressure blowup at large T.
    h_last, _ = lax.fori_loop(0, T, step, (h0, c0), unroll=min(T, 8))

    # fc(h_T): tiny — a VPU broadcast-multiply + lane reduction is the most
    # robust lowering (no extra MXU/transpose traffic for a (Bb, 1) result).
    y = jnp.sum(h_last * wfc_ref[...], axis=1, keepdims=True) + bfc_ref[...]
    out_ref[...] = y.astype(out_ref.dtype)


# ----------------------------------------------------------------------------
# Parameter preparation (PyTorch layout -> fused kernel layout)
# ----------------------------------------------------------------------------
def prepare_kernel_params(raw):
    """Fuse biases, pre-scale the g-gate block by 2, store W_hh in bf16.

    The 2x pre-scale of the g columns lets the kernel recover tanh(z) from a
    single full-width sigmoid: tanh(z) = 2*sigmoid(2z) - 1.  The scale by 2 is
    exact (power of two), also after the bf16 cast of W_hh.
    """
    w_ih = raw["w_ih"].astype(jnp.float32)                   # (4H, 1)
    w_hh = raw["w_hh"].astype(jnp.float32)                   # (4H, H)
    bias = (raw["b_ih"] + raw["b_hh"]).astype(jnp.float32)   # (4H,)
    w_fc = raw["w_fc"].astype(jnp.float32)                   # (1, H)
    b_fc = raw["b_fc"].astype(jnp.float32)                   # (1,)

    H = w_hh.shape[1]
    G = 4 * H
    gscale = jnp.ones((1, G), jnp.float32).at[:, 2 * H:3 * H].set(2.0)

    wih_t = w_ih.T * gscale                                  # (1, 4H)  f32
    whh_t = (w_hh.T * gscale).astype(jnp.bfloat16)           # (H, 4H)  bf16 (MXU)
    bias_t = bias[None, :] * gscale                          # (1, 4H)  f32
    return {"wih": wih_t, "whh": whh_t, "bias": bias_t,
            "wfc": w_fc, "bfc": b_fc[None, :]}


# ----------------------------------------------------------------------------
# Wrapper
# ----------------------------------------------------------------------------
def rnn_model_forward(x, kp):
    """x: (B, T, 1) float32 (batch_first, like PyTorch).
    Returns shape (B,) for B > 1, a scalar for B == 1 (matches torch .squeeze())."""
    B, T, I = x.shape
    assert I == 1
    H = kp["whh"].shape[0]
    G = kp["whh"].shape[1]

    # Batch blocking: a single big block up to 256 rows (single-TC v5e/v6e pay
    # the serial T-step latency once); 256-row lane-aligned blocks beyond that.
    # TODO(synk): on v7x, verify the batch-block axis really splits across the
    # two TensorCores; if plain "parallel" does not change codegen, switch to
    # pltpu.CORE_PARALLEL / pl.core_map and keep nb >= 2.
    if B <= 256:
        B_pad = _round_up(max(B, 8), 8)
        Bb = B_pad
    else:
        Bb = 256
        B_pad = _round_up(B, Bb)
    nb = B_pad // Bb

    # Dense (B_pad, T) input slab: batch on sublanes, time on lanes.
    x2 = jnp.pad(x[..., 0].astype(jnp.float32), ((0, B_pad - B), (0, 0)))

    out = pl.pallas_call(
        _lstm_fc_kernel,
        out_shape=jax.ShapeDtypeStruct((B_pad, 1), jnp.float32),
        grid_spec=pltpu.PrefetchScalarGridSpec(
            num_scalar_prefetch=0,
            grid=(nb,),
            in_specs=[
                pl.BlockSpec((Bb, T), lambda i: (i, 0)),   # x, batch-blocked
                pl.BlockSpec((1, G), lambda i: (0, 0)),    # W_ih^T
                pl.BlockSpec((H, G), lambda i: (0, 0)),    # W_hh^T (bf16)
                pl.BlockSpec((1, G), lambda i: (0, 0)),    # fused bias
                pl.BlockSpec((1, H), lambda i: (0, 0)),    # fc.weight
                pl.BlockSpec((1, 1), lambda i: (0, 0)),    # fc.bias
            ],
            out_specs=pl.BlockSpec((Bb, 1), lambda i: (i, 0)),
        ),
        compiler_params=pltpu.CompilerParams(
            dimension_semantics=("parallel",),   # batch blocks are independent
        ),
    )(x2, kp["wih"], kp["whh"], kp["bias"], kp["wfc"], kp["bfc"])

    return jnp.squeeze(out[:B, 0])


# ----------------------------------------------------------------------------
# Init + pure-JAX reference (PyTorch math, f32, unfused)
# ----------------------------------------------------------------------------
def init_params(key, input_size=1, hidden_size=64):
    """Deterministic init mimicking PyTorch's uniform(-1/sqrt(H), 1/sqrt(H))."""
    k = 1.0 / float(np.sqrt(hidden_size))
    keys = jax.random.split(key, 6)
    u = lambda kk, shape: jax.random.uniform(kk, shape, jnp.float32, -k, k)
    return {
        "w_ih": u(keys[0], (4 * hidden_size, input_size)),   # weight_ih_l0
        "w_hh": u(keys[1], (4 * hidden_size, hidden_size)),  # weight_hh_l0
        "b_ih": u(keys[2], (4 * hidden_size,)),
        "b_hh": u(keys[3], (4 * hidden_size,)),
        "w_fc": u(keys[4], (1, hidden_size)),                # fc.weight
        "b_fc": u(keys[5], (1,)),                            # fc.bias
    }


def _reference_forward(x, raw):
    B, T, _ = x.shape
    H = raw["w_hh"].shape[1]
    wih_t = raw["w_ih"].T
    whh_t = raw["w_hh"].T
    b = (raw["b_ih"] + raw["b_hh"])[None, :]
    h = jnp.zeros((B, H), jnp.float32)
    c = jnp.zeros((B, H), jnp.float32)
    for t in range(T):
        gates = x[:, t, :] @ wih_t + h @ whh_t + b
        i_g = jax.nn.sigmoid(gates[:, 0 * H:1 * H])
        f_g = jax.nn.sigmoid(gates[:, 1 * H:2 * H])
        g_g = jnp.tanh(gates[:, 2 * H:3 * H])
        o_g = jax.nn.sigmoid(gates[:, 3 * H:4 * H])
        c = f_g * c + i_g * g_g
        h = o_g * jnp.tanh(c)
    return jnp.squeeze(h @ raw["w_fc"].T + raw["b_fc"])


if __name__ == "__main__":
    B, T, I, H = 2, 8, 1, 64
    key = jax.random.PRNGKey(0)
    kx, kparams_key = jax.random.split(key)
    x = jax.random.normal(kx, (B, T, I), jnp.float32)

    raw = init_params(kparams_key, input_size=I, hidden_size=H)
    kparams = prepare_kernel_params(raw)

    y = jax.block_until_ready(rnn_model_forward(x, kparams))
    y_ref = jax.block_until_ready(_reference_forward(x, raw))

    assert y.shape == (B,), y.shape
    # Tolerance widened vs a pure-f32 kernel: the recurrent matmul runs with
    # bf16 W_hh / bf16 h (f32 accumulation), which drifts ~1e-3 over T=8 steps
    # against the f32 reference; the fused tanh = 2*sigmoid(2z)-1 identity adds
    # only ~1e-7/step on top.
    np.testing.assert_allclose(np.asarray(y), np.asarray(y_ref),
                               rtol=2e-2, atol=2e-2)
    print("KERNEL_OK")
</pallas_src>

<mosaic_0001>
module attributes {stable_mosaic.version = 11 : i64} {
  func.func @_lstm_fc_kernel(%arg0: i32, %arg1: memref<8x8xf32, #tpu.memory_space<vmem>>, %arg2: memref<1x256xf32, #tpu.memory_space<vmem>>, %arg3: memref<64x256xbf16, #tpu.memory_space<vmem>>, %arg4: memref<1x256xf32, #tpu.memory_space<vmem>>, %arg5: memref<1x64xf32, #tpu.memory_space<vmem>>, %arg6: memref<1x1xf32, #tpu.memory_space<vmem>>, %arg7: memref<8x1xf32, #tpu.memory_space<vmem>>) attributes {dimension_semantics = [#tpu.dimension_semantics<parallel>], iteration_bounds = array<i64: 1>, scalar_prefetch = 0 : i64, scratch_operands = 0 : i64, tpu.core_type = #tpu.core_type<tc>, window_params = [{transform_indices = @transform_0, window_bounds = array<i64: 8, 8>}, {pipeline_mode = #tpu.pipeline_mode<synchronous>, transform_indices = @transform_1, window_bounds = array<i64: 1, 256>}, {pipeline_mode = #tpu.pipeline_mode<synchronous>, transform_indices = @transform_2, window_bounds = array<i64: 64, 256>}, {pipeline_mode = #tpu.pipeline_mode<synchronous>, transform_indices = @transform_3, window_bounds = array<i64: 1, 256>}, {pipeline_mode = #tpu.pipeline_mode<synchronous>, transform_indices = @transform_4, window_bounds = array<i64: 1, 64>}, {pipeline_mode = #tpu.pipeline_mode<synchronous>, transform_indices = @transform_5, window_bounds = array<i64: 1, 1>}, {transform_indices = @transform_6, window_bounds = array<i64: 8, 1>}]} {
    %c0 = arith.constant 0 : index
    %c0_0 = arith.constant 0 : index
    %0 = vector.load %arg3[%c0, %c0_0] : memref<64x256xbf16, #tpu.memory_space<vmem>>, vector<64x256xbf16>
    %c0_1 = arith.constant 0 : index
    %c0_2 = arith.constant 0 : index
    %1 = vector.load %arg2[%c0_1, %c0_2] : memref<1x256xf32, #tpu.memory_space<vmem>>, vector<1x256xf32>
    %c0_3 = arith.constant 0 : index
    %c0_4 = arith.constant 0 : index
    %2 = vector.load %arg4[%c0_3, %c0_4] : memref<1x256xf32, #tpu.memory_space<vmem>>, vector<1x256xf32>
    %c0_5 = arith.constant 0 : index
    %c0_6 = arith.constant 0 : index
    %3 = vector.load %arg1[%c0_5, %c0_6] : memref<8x8xf32, #tpu.memory_space<vmem>>, vector<8x8xf32>
    %4 = tpu.iota {dimensions = array<i32: 1>} : vector<1x8xi32>
    %cst = arith.constant 0.000000e+00 : f32
    %5 = vector.broadcast %cst : f32 to vector<8x64xf32>
    %cst_7 = arith.constant 0.000000e+00 : f32
    %6 = vector.broadcast %cst_7 : f32 to vector<8x64xf32>
    %c0_i32 = arith.constant 0 : i32
    %7 = vector.broadcast %c0_i32 : i32 to vector<1x8xi32>
    %8 = arith.cmpi eq, %4, %7 : vector<1x8xi32>
    %cst_8 = arith.constant 0.000000e+00 : f32
    %9 = vector.shape_cast %8 : vector<1x8xi1> to vector<1x8xi1>
    %10 = vector.broadcast %9 : vector<1x8xi1> to vector<8x8xi1>
    %11 = vector.broadcast %cst_8 : f32 to vector<8x8xf32>
    %12 = arith.select %10, %3, %11 : vector<8x8xi1>, vector<8x8xf32>
    %cst_9 = arith.constant dense<0.000000e+00> : vector<8xf32>
    %13 = vector.multi_reduction <add>, %12, %cst_9 [1] : vector<8x8xf32> to vector<8xf32>
    %14 = vector.shape_cast %13 : vector<8xf32> to vector<8x1xf32>
    %15 = vector.broadcast %14 : vector<8x1xf32> to vector<8x256xf32>
    %16 = vector.broadcast %1 : vector<1x256xf32> to vector<8x256xf32>
    %17 = arith.mulf %15, %16 : vector<8x256xf32>
    %18 = vector.broadcast %2 : vector<1x256xf32> to vector<8x256xf32>
    %19 = arith.addf %17, %18 : vector<8x256xf32>
    %20 = arith.truncf %5 : vector<8x64xf32> to vector<8x64xbf16>
    %cst_10 = arith.constant dense<0.000000e+00> : vector<8x256xf32>
    %21 = tpu.matmul %20, %0, %cst_10 {dimension_numbers = #tpu.dot_dimension_numbers<[1], [0], [0], [1], [0, 0, 1, 1], [], []>} : vector<8x64xbf16>, vector<64x256xbf16>, vector<8x256xf32> -> vector<8x256xf32>
    %22 = arith.addf %19, %21 : vector<8x256xf32>
    %23 = arith.negf %22 : vector<8x256xf32>
    %24 = math.exp %23 : vector<8x256xf32>
    %cst_11 = arith.constant 1.000000e+00 : f32
    %25 = vector.broadcast %cst_11 : f32 to vector<8x256xf32>
    %26 = arith.addf %25, %24 : vector<8x256xf32>
    %27 = arith.divf %25, %26 : vector<8x256xf32>
    %28 = vector.extract_strided_slice %27 {offsets = [0, 0], sizes = [8, 64], strides = [1, 1]} : vector<8x256xf32> to vector<8x64xf32>
    %29 = vector.extract_strided_slice %27 {offsets = [0, 64], sizes = [8, 64], strides = [1, 1]} : vector<8x256xf32> to vector<8x64xf32>
    %30 = vector.extract_strided_slice %27 {offsets = [0, 128], sizes = [8, 64], strides = [1, 1]} : vector<8x256xf32> to vector<8x64xf32>
    %cst_12 = arith.constant 2.000000e+00 : f32
    %31 = vector.broadcast %cst_12 : f32 to vector<8x64xf32>
    %32 = arith.mulf %31, %30 : vector<8x64xf32>
    %cst_13 = arith.constant 1.000000e+00 : f32
    %33 = vector.broadcast %cst_13 : f32 to vector<8x64xf32>
    %34 = arith.subf %32, %33 : vector<8x64xf32>
    %35 = vector.extract_strided_slice %27 {offsets = [0, 192], sizes = [8, 64], strides = [1, 1]} : vector<8x256xf32> to vector<8x64xf32>
    %36 = arith.mulf %29, %6 : vector<8x64xf32>
    %37 = arith.mulf %28, %34 : vector<8x64xf32>
    %38 = arith.addf %36, %37 : vector<8x64xf32>
    %39 = math.tanh %38 : vector<8x64xf32>
    %40 = arith.mulf %35, %39 : vector<8x64xf32>
    %c1_i32 = arith.constant 1 : i32
    %41 = vector.broadcast %c1_i32 : i32 to vector<1x8xi32>
    %42 = arith.cmpi eq, %4, %41 : vector<1x8xi32>
    %cst_14 = arith.constant 0.000000e+00 : f32
    %43 = vector.shape_cast %42 : vector<1x8xi1> to vector<1x8xi1>
    %44 = vector.broadcast %43 : vector<1x8xi1> to vector<8x8xi1>
    %45 = vector.broadcast %cst_14 : f32 to vector<8x8xf32>
    %46 = arith.select %44, %3, %45 : vector<8x8xi1>, vector<8x8xf32>
    %cst_15 = arith.constant dense<0.000000e+00> : vector<8xf32>
    %47 = vector.multi_reduction <add>, %46, %cst_15 [1] : vector<8x8xf32> to vector<8xf32>
    %48 = vector.shape_cast %47 : vector<8xf32> to vector<8x1xf32>
    %49 = vector.broadcast %48 : vector<8x1xf32> to vector<8x256xf32>
    %50 = vector.broadcast %1 : vector<1x256xf32> to vector<8x256xf32>
    %51 = arith.mulf %49, %50 : vector<8x256xf32>
    %52 = vector.broadcast %2 : vector<1x256xf32> to vector<8x256xf32>
    %53 = arith.addf %51, %52 : vector<8x256xf32>
    %54 = arith.truncf %40 : vector<8x64xf32> to vector<8x64xbf16>
    %cst_16 = arith.constant dense<0.000000e+00> : vector<8x256xf32>
    %55 = tpu.matmul %54, %0, %cst_16 {dimension_numbers = #tpu.dot_dimension_numbers<[1], [0], [0], [1], [0, 0, 1, 1], [], []>} : vector<8x64xbf16>, vector<64x256xbf16>, vector<8x256xf32> -> vector<8x256xf32>
    %56 = arith.addf %53, %55 : vector<8x256xf32>
    %57 = arith.negf %56 : vector<8x256xf32>
    %58 = math.exp %57 : vector<8x256xf32>
    %cst_17 = arith.constant 1.000000e+00 : f32
    %59 = vector.broadcast %cst_17 : f32 to vector<8x256xf32>
    %60 = arith.addf %59, %58 : vector<8x256xf32>
    %61 = arith.divf %59, %60 : vector<8x256xf32>
    %62 = vector.extract_strided_slice %61 {offsets = [0, 0], sizes = [8, 64], strides = [1, 1]} : vector<8x256xf32> to vector<8x64xf32>
    %63 = vector.extract_strided_slice %61 {offsets = [0, 64], sizes = [8, 64], strides = [1, 1]} : vector<8x256xf32> to vector<8x64xf32>
    %64 = vector.extract_strided_slice %61 {offsets = [0, 128], sizes = [8, 64], strides = [1, 1]} : vector<8x256xf32> to vector<8x64xf32>
    %cst_18 = arith.constant 2.000000e+00 : f32
    %65 = vector.broadcast %cst_18 : f32 to vector<8x64xf32>
    %66 = arith.mulf %65, %64 : vector<8x64xf32>
    %cst_19 = arith.constant 1.000000e+00 : f32
    %67 = vector.broadcast %cst_19 : f32 to vector<8x64xf32>
    %68 = arith.subf %66, %67 : vector<8x64xf32>
    %69 = vector.extract_strided_slice %61 {offsets = [0, 192], sizes = [8, 64], strides = [1, 1]} : vector<8x256xf32> to vector<8x64xf32>
    %70 = arith.mulf %63, %38 : vector<8x64xf32>
    %71 = arith.mulf %62, %68 : vector<8x64xf32>
    %72 = arith.addf %70, %71 : vector<8x64xf32>
    %73 = math.tanh %72 : vector<8x64xf32>
    %74 = arith.mulf %69, %73 : vector<8x64xf32>
    %c2_i32 = arith.constant 2 : i32
    %75 = vector.broadcast %c2_i32 : i32 to vector<1x8xi32>
    %76 = arith.cmpi eq, %4, %75 : vector<1x8xi32>
    %cst_20 = arith.constant 0.000000e+00 : f32
    %77 = vector.shape_cast %76 : vector<1x8xi1> to vector<1x8xi1>
    %78 = vector.broadcast %77 : vector<1x8xi1> to vector<8x8xi1>
    %79 = vector.broadcast %cst_20 : f32 to vector<8x8xf32>
    %80 = arith.select %78, %3, %79 : vector<8x8xi1>, vector<8x8xf32>
    %cst_21 = arith.constant dense<0.000000e+00> : vector<8xf32>
    %81 = vector.multi_reduction <add>, %80, %cst_21 [1] : vector<8x8xf32> to vector<8xf32>
    %82 = vector.shape_cast %81 : vector<8xf32> to vector<8x1xf32>
    %83 = vector.broadcast %82 : vector<8x1xf32> to vector<8x256xf32>
    %84 = vector.broadcast %1 : vector<1x256xf32> to vector<8x256xf32>
    %85 = arith.mulf %83, %84 : vector<8x256xf32>
    %86 = vector.broadcast %2 : vector<1x256xf32> to vector<8x256xf32>
    %87 = arith.addf %85, %86 : vector<8x256xf32>
    %88 = arith.truncf %74 : vector<8x64xf32> to vector<8x64xbf16>
    %cst_22 = arith.constant dense<0.000000e+00> : vector<8x256xf32>
    %89 = tpu.matmul %88, %0, %cst_22 {dimension_numbers = #tpu.dot_dimension_numbers<[1], [0], [0], [1], [0, 0, 1, 1], [], []>} : vector<8x64xbf16>, vector<64x256xbf16>, vector<8x256xf32> -> vector<8x256xf32>
    %90 = arith.addf %87, %89 : vector<8x256xf32>
    %91 = arith.negf %90 : vector<8x256xf32>
    %92 = math.exp %91 : vector<8x256xf32>
    %cst_23 = arith.constant 1.000000e+00 : f32
    %93 = vector.broadcast %cst_23 : f32 to vector<8x256xf32>
    %94 = arith.addf %93, %92 : vector<8x256xf32>
    %95 = arith.divf %93, %94 : vector<8x256xf32>
    %96 = vector.extract_strided_slice %95 {offsets = [0, 0], sizes = [8, 64], strides = [1, 1]} : vector<8x256xf32> to vector<8x64xf32>
    %97 = vector.extract_strided_slice %95 {offsets = [0, 64], sizes = [8, 64], strides = [1, 1]} : vector<8x256xf32> to vector<8x64xf32>
    %98 = vector.extract_strided_slice %95 {offsets = [0, 128], sizes = [8, 64], strides = [1, 1]} : vector<8x256xf32> to vector<8x64xf32>
    %cst_24 = arith.constant 2.000000e+00 : f32
    %99 = vector.broadcast %cst_24 : f32 to vector<8x64xf32>
    %100 = arith.mulf %99, %98 : vector<8x64xf32>
    %cst_25 = arith.constant 1.000000e+00 : f32
    %101 = vector.broadcast %cst_25 : f32 to vector<8x64xf32>
    %102 = arith.subf %100, %101 : vector<8x64xf32>
    %103 = vector.extract_strided_slice %95 {offsets = [0, 192], sizes = [8, 64], strides = [1, 1]} : vector<8x256xf32> to vector<8x64xf32>
    %104 = arith.mulf %97, %72 : vector<8x64xf32>
    %105 = arith.mulf %96, %102 : vector<8x64xf32>
    %106 = arith.addf %104, %105 : vector<8x64xf32>
    %107 = math.tanh %106 : vector<8x64xf32>
    %108 = arith.mulf %103, %107 : vector<8x64xf32>
    %c3_i32 = arith.constant 3 : i32
    %109 = vector.broadcast %c3_i32 : i32 to vector<1x8xi32>
    %110 = arith.cmpi eq, %4, %109 : vector<1x8xi32>
    %cst_26 = arith.constant 0.000000e+00 : f32
    %111 = vector.shape_cast %110 : vector<1x8xi1> to vector<1x8xi1>
    %112 = vector.broadcast %111 : vector<1x8xi1> to vector<8x8xi1>
    %113 = vector.broadcast %cst_26 : f32 to vector<8x8xf32>
    %114 = arith.select %112, %3, %113 : vector<8x8xi1>, vector<8x8xf32>
    %cst_27 = arith.constant dense<0.000000e+00> : vector<8xf32>
    %115 = vector.multi_reduction <add>, %114, %cst_27 [1] : vector<8x8xf32> to vector<8xf32>
    %116 = vector.shape_cast %115 : vector<8xf32> to vector<8x1xf32>
    %117 = vector.broadcast %116 : vector<8x1xf32> to vector<8x256xf32>
    %118 = vector.broadcast %1 : vector<1x256xf32> to vector<8x256xf32>
    %119 = arith.mulf %117, %118 : vector<8x256xf32>
    %120 = vector.broadcast %2 : vector<1x256xf32> to vector<8x256xf32>
    %121 = arith.addf %119, %120 : vector<8x256xf32>
    %122 = arith.truncf %108 : vector<8x64xf32> to vector<8x64xbf16>
    %cst_28 = arith.constant dense<0.000000e+00> : vector<8x256xf32>
    %123 = tpu.matmul %122, %0, %cst_28 {dimension_numbers = #tpu.dot_dimension_numbers<[1], [0], [0], [1], [0, 0, 1, 1], [], []>} : vector<8x64xbf16>, vector<64x256xbf16>, vector<8x256xf32> -> vector<8x256xf32>
    %124 = arith.addf %121, %123 : vector<8x256xf32>
    %125 = arith.negf %124 : vector<8x256xf32>
    %126 = math.exp %125 : vector<8x256xf32>
    %cst_29 = arith.constant 1.000000e+00 : f32
    %127 = vector.broadcast %cst_29 : f32 to vector<8x256xf32>
    %128 = arith.addf %127, %126 : vector<8x256xf32>
    %129 = arith.divf %127, %128 : vector<8x256xf32>
    %130 = vector.extract_strided_slice %129 {offsets = [0, 0], sizes = [8, 64], strides = [1, 1]} : vector<8x256xf32> to vector<8x64xf32>
    %131 = vector.extract_strided_slice %129 {offsets = [0, 64], sizes = [8, 64], strides = [1, 1]} : vector<8x256xf32> to vector<8x64xf32>
    %132 = vector.extract_strided_slice %129 {offsets = [0, 128], sizes = [8, 64], strides = [1, 1]} : vector<8x256xf32> to vector<8x64xf32>
    %cst_30 = arith.constant 2.000000e+00 : f32
    %133 = vector.broadcast %cst_30 : f32 to vector<8x64xf32>
    %134 = arith.mulf %133, %132 : vector<8x64xf32>
    %cst_31 = arith.constant 1.000000e+00 : f32
    %135 = vector.broadcast %cst_31 : f32 to vector<8x64xf32>
    %136 = arith.subf %134, %135 : vector<8x64xf32>
    %137 = vector.extract_strided_slice %129 {offsets = [0, 192], sizes = [8, 64], strides = [1, 1]} : vector<8x256xf32> to vector<8x64xf32>
    %138 = arith.mulf %131, %106 : vector<8x64xf32>
    %139 = arith.mulf %130, %136 : vector<8x64xf32>
    %140 = arith.addf %138, %139 : vector<8x64xf32>
    %141 = math.tanh %140 : vector<8x64xf32>
    %142 = arith.mulf %137, %141 : vector<8x64xf32>
    %c4_i32 = arith.constant 4 : i32
    %143 = vector.broadcast %c4_i32 : i32 to vector<1x8xi32>
    %144 = arith.cmpi eq, %4, %143 : vector<1x8xi32>
    %cst_32 = arith.constant 0.000000e+00 : f32
    %145 = vector.shape_cast %144 : vector<1x8xi1> to vector<1x8xi1>
    %146 = vector.broadcast %145 : vector<1x8xi1> to vector<8x8xi1>
    %147 = vector.broadcast %cst_32 : f32 to vector<8x8xf32>
    %148 = arith.select %146, %3, %147 : vector<8x8xi1>, vector<8x8xf32>
    %cst_33 = arith.constant dense<0.000000e+00> : vector<8xf32>
    %149 = vector.multi_reduction <add>, %148, %cst_33 [1] : vector<8x8xf32> to vector<8xf32>
    %150 = vector.shape_cast %149 : vector<8xf32> to vector<8x1xf32>
    %151 = vector.broadcast %150 : vector<8x1xf32> to vector<8x256xf32>
    %152 = vector.broadcast %1 : vector<1x256xf32> to vector<8x256xf32>
    %153 = arith.mulf %151, %152 : vector<8x256xf32>
    %154 = vector.broadcast %2 : vector<1x256xf32> to vector<8x256xf32>
    %155 = arith.addf %153, %154 : vector<8x256xf32>
    %156 = arith.truncf %142 : vector<8x64xf32> to vector<8x64xbf16>
    %cst_34 = arith.constant dense<0.000000e+00> : vector<8x256xf32>
    %157 = tpu.matmul %156, %0, %cst_34 {dimension_numbers = #tpu.dot_dimension_numbers<[1], [0], [0], [1], [0, 0, 1, 1], [], []>} : vector<8x64xbf16>, vector<64x256xbf16>, vector<8x256xf32> -> vector<8x256xf32>
    %158 = arith.addf %155, %157 : vector<8x256xf32>
    %159 = arith.negf %158 : vector<8x256xf32>
    %160 = math.exp %159 : vector<8x256xf32>
    %cst_35 = arith.constant 1.000000e+00 : f32
    %161 = vector.broadcast %cst_35 : f32 to vector<8x256xf32>
    %162 = arith.addf %161, %160 : vector<8x256xf32>
    %163 = arith.divf %161, %162 : vector<8x256xf32>
    %164 = vector.extract_strided_slice %163 {offsets = [0, 0], sizes = [8, 64], strides = [1, 1]} : vector<8x256xf32> to vector<8x64xf32>
    %165 = vector.extract_strided_slice %163 {offsets = [0, 64], sizes = [8, 64], strides = [1, 1]} : vector<8x256xf32> to vector<8x64xf32>
    %166 = vector.extract_strided_slice %163 {offsets = [0, 128], sizes = [8, 64], strides = [1, 1]} : vector<8x256xf32> to vector<8x64xf32>
    %cst_36 = arith.constant 2.000000e+00 : f32
    %167 = vector.broadcast %cst_36 : f32 to vector<8x64xf32>
    %168 = arith.mulf %167, %166 : vector<8x64xf32>
    %cst_37 = arith.constant 1.000000e+00 : f32
    %169 = vector.broadcast %cst_37 : f32 to vector<8x64xf32>
    %170 = arith.subf %168, %169 : vector<8x64xf32>
    %171 = vector.extract_strided_slice %163 {offsets = [0, 192], sizes = [8, 64], strides = [1, 1]} : vector<8x256xf32> to vector<8x64xf32>
    %172 = arith.mulf %165, %140 : vector<8x64xf32>
    %173 = arith.mulf %164, %170 : vector<8x64xf32>
    %174 = arith.addf %172, %173 : vector<8x64xf32>
    %175 = math.tanh %174 : vector<8x64xf32>
    %176 = arith.mulf %171, %175 : vector<8x64xf32>
    %c5_i32 = arith.constant 5 : i32
    %177 = vector.broadcast %c5_i32 : i32 to vector<1x8xi32>
    %178 = arith.cmpi eq, %4, %177 : vector<1x8xi32>
    %cst_38 = arith.constant 0.000000e+00 : f32
    %179 = vector.shape_cast %178 : vector<1x8xi1> to vector<1x8xi1>
    %180 = vector.broadcast %179 : vector<1x8xi1> to vector<8x8xi1>
    %181 = vector.broadcast %cst_38 : f32 to vector<8x8xf32>
    %182 = arith.select %180, %3, %181 : vector<8x8xi1>, vector<8x8xf32>
    %cst_39 = arith.constant dense<0.000000e+00> : vector<8xf32>
    %183 = vector.multi_reduction <add>, %182, %cst_39 [1] : vector<8x8xf32> to vector<8xf32>
    %184 = vector.shape_cast %183 : vector<8xf32> to vector<8x1xf32>
    %185 = vector.broadcast %184 : vector<8x1xf32> to vector<8x256xf32>
    %186 = vector.broadcast %1 : vector<1x256xf32> to vector<8x256xf32>
    %187 = arith.mulf %185, %186 : vector<8x256xf32>
    %188 = vector.broadcast %2 : vector<1x256xf32> to vector<8x256xf32>
    %189 = arith.addf %187, %188 : vector<8x256xf32>
    %190 = arith.truncf %176 : vector<8x64xf32> to vector<8x64xbf16>
    %cst_40 = arith.constant dense<0.000000e+00> : vector<8x256xf32>
    %191 = tpu.matmul %190, %0, %cst_40 {dimension_numbers = #tpu.dot_dimension_numbers<[1], [0], [0], [1], [0, 0, 1, 1], [], []>} : vector<8x64xbf16>, vector<64x256xbf16>, vector<8x256xf32> -> vector<8x256xf32>
    %192 = arith.addf %189, %191 : vector<8x256xf32>
    %193 = arith.negf %192 : vector<8x256xf32>
    %194 = math.exp %193 : vector<8x256xf32>
    %cst_41 = arith.constant 1.000000e+00 : f32
    %195 = vector.broadcast %cst_41 : f32 to vector<8x256xf32>
    %196 = arith.addf %195, %194 : vector<8x256xf32>
    %197 = arith.divf %195, %196 : vector<8x256xf32>
    %198 = vector.extract_strided_slice %197 {offsets = [0, 0], sizes = [8, 64], strides = [1, 1]} : vector<8x256xf32> to vector<8x64xf32>
    %199 = vector.extract_strided_slice %197 {offsets = [0, 64], sizes = [8, 64], strides = [1, 1]} : vector<8x256xf32> to vector<8x64xf32>
    %200 = vector.extract_strided_slice %197 {offsets = [0, 128], sizes = [8, 64], strides = [1, 1]} : vector<8x256xf32> to vector<8x64xf32>
    %cst_42 = arith.constant 2.000000e+00 : f32
    %201 = vector.broadcast %cst_42 : f32 to vector<8x64xf32>
    %202 = arith.mulf %201, %200 : vector<8x64xf32>
    %cst_43 = arith.constant 1.000000e+00 : f32
    %203 = vector.broadcast %cst_43 : f32 to vector<8x64xf32>
    %204 = arith.subf %202, %203 : vector<8x64xf32>
    %205 = vector.extract_strided_slice %197 {offsets = [0, 192], sizes = [8, 64], strides = [1, 1]} : vector<8x256xf32> to vector<8x64xf32>
    %206 = arith.mulf %199, %174 : vector<8x64xf32>
    %207 = arith.mulf %198, %204 : vector<8x64xf32>
    %208 = arith.addf %206, %207 : vector<8x64xf32>
    %209 = math.tanh %208 : vector<8x64xf32>
    %210 = arith.mulf %205, %209 : vector<8x64xf32>
    %c6_i32 = arith.constant 6 : i32
    %211 = vector.broadcast %c6_i32 : i32 to vector<1x8xi32>
    %212 = arith.cmpi eq, %4, %211 : vector<1x8xi32>
    %cst_44 = arith.constant 0.000000e+00 : f32
    %213 = vector.shape_cast %212 : vector<1x8xi1> to vector<1x8xi1>
    %214 = vector.broadcast %213 : vector<1x8xi1> to vector<8x8xi1>
    %215 = vector.broadcast %cst_44 : f32 to vector<8x8xf32>
    %216 = arith.select %214, %3, %215 : vector<8x8xi1>, vector<8x8xf32>
    %cst_45 = arith.constant dense<0.000000e+00> : vector<8xf32>
    %217 = vector.multi_reduction <add>, %216, %cst_45 [1] : vector<8x8xf32> to vector<8xf32>
    %218 = vector.shape_cast %217 : vector<8xf32> to vector<8x1xf32>
    %219 = vector.broadcast %218 : vector<8x1xf32> to vector<8x256xf32>
    %220 = vector.broadcast %1 : vector<1x256xf32> to vector<8x256xf32>
    %221 = arith.mulf %219, %220 : vector<8x256xf32>
    %222 = vector.broadcast %2 : vector<1x256xf32> to vector<8x256xf32>
    %223 = arith.addf %221, %222 : vector<8x256xf32>
    %224 = arith.truncf %210 : vector<8x64xf32> to vector<8x64xbf16>
    %cst_46 = arith.constant dense<0.000000e+00> : vector<8x256xf32>
    %225 = tpu.matmul %224, %0, %cst_46 {dimension_numbers = #tpu.dot_dimension_numbers<[1], [0], [0], [1], [0, 0, 1, 1], [], []>} : vector<8x64xbf16>, vector<64x256xbf16>, vector<8x256xf32> -> vector<8x256xf32>
    %226 = arith.addf %223, %225 : vector<8x256xf32>
    %227 = arith.negf %226 : vector<8x256xf32>
    %228 = math.exp %227 : vector<8x256xf32>
    %cst_47 = arith.constant 1.000000e+00 : f32
    %229 = vector.broadcast %cst_47 : f32 to vector<8x256xf32>
    %230 = arith.addf %229, %228 : vector<8x256xf32>
    %231 = arith.divf %229, %230 : vector<8x256xf32>
    %232 = vector.extract_strided_slice %231 {offsets = [0, 0], sizes = [8, 64], strides = [1, 1]} : vector<8x256xf32> to vector<8x64xf32>
    %233 = vector.extract_strided_slice %231 {offsets = [0, 64], sizes = [8, 64], strides = [1, 1]} : vector<8x256xf32> to vector<8x64xf32>
    %234 = vector.extract_strided_slice %231 {offsets = [0, 128], sizes = [8, 64], strides = [1, 1]} : vector<8x256xf32> to vector<8x64xf32>
    %cst_48 = arith.constant 2.000000e+00 : f32
    %235 = vector.broadcast %cst_48 : f32 to vector<8x64xf32>
    %236 = arith.mulf %235, %234 : vector<8x64xf32>
    %cst_49 = arith.constant 1.000000e+00 : f32
    %237 = vector.broadcast %cst_49 : f32 to vector<8x64xf32>
    %238 = arith.subf %236, %237 : vector<8x64xf32>
    %239 = vector.extract_strided_slice %231 {offsets = [0, 192], sizes = [8, 64], strides = [1, 1]} : vector<8x256xf32> to vector<8x64xf32>
    %240 = arith.mulf %233, %208 : vector<8x64xf32>
    %241 = arith.mulf %232, %238 : vector<8x64xf32>
    %242 = arith.addf %240, %241 : vector<8x64xf32>
    %243 = math.tanh %242 : vector<8x64xf32>
    %244 = arith.mulf %239, %243 : vector<8x64xf32>
    %c7_i32 = arith.constant 7 : i32
    %245 = vector.broadcast %c7_i32 : i32 to vector<1x8xi32>
    %246 = arith.cmpi eq, %4, %245 : vector<1x8xi32>
    %cst_50 = arith.constant 0.000000e+00 : f32
    %247 = vector.shape_cast %246 : vector<1x8xi1> to vector<1x8xi1>
    %248 = vector.broadcast %247 : vector<1x8xi1> to vector<8x8xi1>
    %249 = vector.broadcast %cst_50 : f32 to vector<8x8xf32>
    %250 = arith.select %248, %3, %249 : vector<8x8xi1>, vector<8x8xf32>
    %cst_51 = arith.constant dense<0.000000e+00> : vector<8xf32>
    %251 = vector.multi_reduction <add>, %250, %cst_51 [1] : vector<8x8xf32> to vector<8xf32>
    %252 = vector.shape_cast %251 : vector<8xf32> to vector<8x1xf32>
    %253 = vector.broadcast %252 : vector<8x1xf32> to vector<8x256xf32>
    %254 = vector.broadcast %1 : vector<1x256xf32> to vector<8x256xf32>
    %255 = arith.mulf %253, %254 : vector<8x256xf32>
    %256 = vector.broadcast %2 : vector<1x256xf32> to vector<8x256xf32>
    %257 = arith.addf %255, %256 : vector<8x256xf32>
    %258 = arith.truncf %244 : vector<8x64xf32> to vector<8x64xbf16>
    %cst_52 = arith.constant dense<0.000000e+00> : vector<8x256xf32>
    %259 = tpu.matmul %258, %0, %cst_52 {dimension_numbers = #tpu.dot_dimension_numbers<[1], [0], [0], [1], [0, 0, 1, 1], [], []>} : vector<8x64xbf16>, vector<64x256xbf16>, vector<8x256xf32> -> vector<8x256xf32>
    %260 = arith.addf %257, %259 : vector<8x256xf32>
    %261 = arith.negf %260 : vector<8x256xf32>
    %262 = math.exp %261 : vector<8x256xf32>
    %cst_53 = arith.constant 1.000000e+00 : f32
    %263 = vector.broadcast %cst_53 : f32 to vector<8x256xf32>
    %264 = arith.addf %263, %262 : vector<8x256xf32>
    %265 = arith.divf %263, %264 : vector<8x256xf32>
    %266 = vector.extract_strided_slice %265 {offsets = [0, 0], sizes = [8, 64], strides = [1, 1]} : vector<8x256xf32> to vector<8x64xf32>
    %267 = vector.extract_strided_slice %265 {offsets = [0, 64], sizes = [8, 64], strides = [1, 1]} : vector<8x256xf32> to vector<8x64xf32>
    %268 = vector.extract_strided_slice %265 {offsets = [0, 128], sizes = [8, 64], strides = [1, 1]} : vector<8x256xf32> to vector<8x64xf32>
    %cst_54 = arith.constant 2.000000e+00 : f32
    %269 = vector.broadcast %cst_54 : f32 to vector<8x64xf32>
    %270 = arith.mulf %269, %268 : vector<8x64xf32>
    %cst_55 = arith.constant 1.000000e+00 : f32
    %271 = vector.broadcast %cst_55 : f32 to vector<8x64xf32>
    %272 = arith.subf %270, %271 : vector<8x64xf32>
    %273 = vector.extract_strided_slice %265 {offsets = [0, 192], sizes = [8, 64], strides = [1, 1]} : vector<8x256xf32> to vector<8x64xf32>
    %274 = arith.mulf %267, %242 : vector<8x64xf32>
    %275 = arith.mulf %266, %272 : vector<8x64xf32>
    %276 = arith.addf %274, %275 : vector<8x64xf32>
    %277 = math.tanh %276 : vector<8x64xf32>
    %278 = arith.mulf %273, %277 : vector<8x64xf32>
    %c8_i32 = arith.constant 8 : i32
    %c0_56 = arith.constant 0 : index
    %c0_57 = arith.constant 0 : index
    %279 = vector.load %arg5[%c0_56, %c0_57] : memref<1x64xf32, #tpu.memory_space<vmem>>, vector<1x64xf32>
    %280 = vector.broadcast %279 : vector<1x64xf32> to vector<8x64xf32>
    %281 = arith.mulf %278, %280 : vector<8x64xf32>
    %cst_58 = arith.constant dense<0.000000e+00> : vector<8xf32>
    %282 = vector.multi_reduction <add>, %281, %cst_58 [1] : vector<8x64xf32> to vector<8xf32>
    %283 = vector.shape_cast %282 : vector<8xf32> to vector<8x1xf32>
    %c0_59 = arith.constant 0 : index
    %c0_60 = arith.constant 0 : index
    %284 = vector.load %arg6[%c0_59, %c0_60] : memref<1x1xf32, #tpu.memory_space<vmem>>, vector<1x1xf32>
    %285 = vector.broadcast %284 : vector<1x1xf32> to vector<8x1xf32>
    %286 = arith.addf %283, %285 : vector<8x1xf32>
    %c0_61 = arith.constant 0 : index
    %c0_62 = arith.constant 0 : index
    %287 = vector.load %arg7[%c0_61, %c0_62] : memref<8x1xf32, #tpu.memory_space<vmem>>, vector<8x1xf32>
    tpu.vector_store %arg7[%c0_61, %c0_62], %286 {strides = array<i32>} : memref<8x1xf32, #tpu.memory_space<vmem>>, vector<8x1xf32>,
    return
  }
  func.func @transform_0(%arg0: i32) -> (i32, i32) {
    %c0_i32 = arith.constant 0 : i32
    %c0_i32_0 = arith.constant 0 : i32
    return %arg0, %c0_i32 : i32, i32
  }
  func.func @transform_1(%arg0: i32) -> (i32, i32) {
    %c0_i32 = arith.constant 0 : i32
    %c0_i32_0 = arith.constant 0 : i32
    %c0_i32_1 = arith.constant 0 : i32
    return %c0_i32, %c0_i32_0 : i32, i32
  }
  func.func @transform_2(%arg0: i32) -> (i32, i32) {
    %c0_i32 = arith.constant 0 : i32
    %c0_i32_0 = arith.constant 0 : i32
    %c0_i32_1 = arith.constant 0 : i32
    return %c0_i32, %c0_i32_0 : i32, i32
  }
  func.func @transform_3(%arg0: i32) -> (i32, i32) {
    %c0_i32 = arith.constant 0 : i32
    %c0_i32_0 = arith.constant 0 : i32
    %c0_i32_1 = arith.constant 0 : i32
    return %c0_i32, %c0_i32_0 : i32, i32
  }
  func.func @transform_4(%arg0: i32) -> (i32, i32) {
    %c0_i32 = arith.constant 0 : i32
    %c0_i32_0 = arith.constant 0 : i32
    %c0_i32_1 = arith.constant 0 : i32
    return %c0_i32, %c0_i32_0 : i32, i32
  }
  func.func @transform_5(%arg0: i32) -> (i32, i32) {
    %c0_i32 = arith.constant 0 : i32
    %c0_i32_0 = arith.constant 0 : i32
    %c0_i32_1 = arith.constant 0 : i32
    return %c0_i32, %c0_i32_0 : i32, i32
  }
  func.func @transform_6(%arg0: i32) -> (i32, i32) {
    %c0_i32 = arith.constant 0 : i32
    %c0_i32_0 = arith.constant 0 : i32
    return %arg0, %c0_i32 : i32, i32
  }
}

</mosaic_0001>

<bundles_post_ra>
// kernel: tpu_custom_call.1
= control target key start
LH: loop header
LB: loop body
LE: loop exit
PB: predicated region body
PF: predicated region fallthrough
CT: control target
= control target key end

     0   :  { %s1392_s0 = inlined_call_operand.hbm [shape: f32[8,8], index: 0, kind: input, shape index: {}]   ;;  %s1393_s1 = inlined_call_operand.vmem [shape: f32[1,256], index: 1, kind: input, shape index: {}]   ;;  %s1394_s2 = inlined_call_operand.hbm [shape: bf16[64,256], index: 2, kind: input, shape index: {}]   ;;  %s1395_s3 = inlined_call_operand.vmem [shape: f32[1,256], index: 3, kind: input, shape index: {}]   ;;  %s1396_s4 = inlined_call_operand.vmem [shape: f32[1,64], index: 4, kind: input, shape index: {}]   ;;  %s1397_s5 = inlined_call_operand.<no memory space> [shape: f32[1,1], index: 5, kind: input, shape index: {}]   ;;  %s1398_s6 = inlined_call_operand.vmem [shape: f32[8,1], index: 6, kind: output, shape index: {}]  }
   0x1   :  { %v11_v0 = vstv %s1397_s5 }
   0x2   :  { %12 = vst [vmem:[#allocation2] sm:$0x1] %v11_v0 }
   0x3   :  { %13 = vsyncpa [#allocation4], 0  ;;  %s20_s25 = sshll.u32 %s1392_s0, 4  ;;  %s21_s25 = int_to_ptr.hbm [resolvable:$true] %s20_s25 }
   0x4   :  { %14 = vsyncpa [#allocation6], 0  ;;  %s1123_s26 = smov [#allocation3]   ;;  %s32_s30 = sshll.u32 %s1394_s2, 4  ;;  %s33_s30 = int_to_ptr.hbm [resolvable:$true] %s32_s30 }
   0x5   :  { %s22_s27 = sshll.u32 %s1123_s26, 4  ;;  %s1124_s7 = smov [#allocation5]   ;;  %s23_s27 = int_to_ptr.vmem [resolvable:$true] %s22_s27 }
   0x6   :  { %25 = dma.hbm_to_vmem [thread:$0]  %s21_s25, 128, %s23_s27, [#allocation4]  }
   0x7   :  { %s34_s8 = sshll.u32 %s1124_s7, 4  ;;  %s1125_s5 = smov 128   ;;  %s35_s8 = int_to_ptr.vmem [resolvable:$true] %s34_s8 }
   0x8   :  { %s1126_s9 = smov 8  }
   0x9   :  { %40 = dma.hbm_to_vmem [thread:$0]  %s33_s30, 1024, %s35_s8, [#allocation6], %s1125_s5, %s1125_s5, %s1126_s9  }
   0xa   :  { %1119 = dma.done.wait [#allocation4], 128  }
   0xb   :  { %1120 = vsyncadd [#allocation4], 4294967168 }
   0xc   :  { %1121 = dma.done.wait [#allocation6], 1024  }
   0xd   :  { %1122 = vsyncadd [#allocation6], 4294966272  ;;  %v67_v1 = vlaneseq  ;;  %v930_v3 = vld [vmem:[#allocation5 + $0x30] sm:$0xf]  ;;  %v981_v4 = vld [vmem:[#allocation5 + $0x34] sm:$0xf0] }
   0xe   :  { %v980_v5 = vld [vmem:[#allocation5 + $0x34] sm:$0xf]  ;;  %v1175_v6 = vor.u32 %v981_v4, %v930_v3  ;;  %v932_v7 = vld [vmem:[#allocation5 + $0x38] sm:$0xf0]  ;;  %v922_v8 = vld [vmem:[#allocation5 + $0x20] sm:$0xf] }
   0xf   :  { %v1173_v2 = vand.u32 127, %v67_v1  ;;  %v979_v9 = vld [vmem:[#allocation5 + $0x24] sm:$0xf0]  ;;  %v1177_v10 = vor.u32 %v980_v5, %v932_v7  ;;  %v978_v11 = vld [vmem:[#allocation5 + $0x24] sm:$0xf]  ;;  %vm73_vm1 = vcmask 64512  }
  0x10   :  { %v924_v12 = vld [vmem:[#allocation5 + $0x28] sm:$0xf0]  ;;  %139 = vmatpush.bf16.msra.mxu0 %v1175_v6  ;;  %v1180_v13 = vor.u32 %v979_v9, %v922_v8  ;;  %234 = vmatpush.bf16.msra.mxu2 %v1175_v6  ;;  %v914_v15 = vld [vmem:[#allocation5 + $0x10] sm:$0xf]  ;;  %v977_v16 = vld [vmem:[#allocation5 + $0x14] sm:$0xf0] }
  0x11   :  { %vm69_vm0 = vcmp.eq.s32.totalorder %v1173_v2, 0  ;;  %152 = vmatpush.bf16.msra.mxu1 %v1177_v10  ;;  %v1185_v14 = vor.u32 %v978_v11, %v924_v12  ;;  %v976_v17 = vld [vmem:[#allocation5 + $0x14] sm:$0xf]  ;;  %247 = vmatpush.bf16.msra.mxu3 %v1177_v10  ;;  %v916_v18 = vld [vmem:[#allocation5 + $0x18] sm:$0xf0]  ;;  %v1192_v21 = vor.u32 %v977_v16, %v914_v15  ;;  %v1127_v30 = vmov 0  }
  0x12   :  { %v1188_v19 = vld [vmem:[#allocation3] sm:$0xff]  ;;  %v1197_v23 = vor.u32 %v976_v17, %v916_v18  ;;  %v906_v24 = vld [vmem:[#allocation5] sm:$0xf]  ;;  %v975_v25 = vld [vmem:[#allocation5 + $0x4] sm:$0xf0]  ;;  %vm212_vm10 = vcmp.eq.s32.totalorder %v1173_v2, 1 }
  0x13   :  { %v72_v20 = vsel %vm69_vm0, %v1188_v19, 0.0  ;;  %v974_v26 = vld [vmem:[#allocation5 + $0x4] sm:$0xf]  ;;  %v908_v27 = vld [vmem:[#allocation5 + $0x8] sm:$0xf0]  ;;  %v1201_v28 = vor.u32 %v975_v25, %v906_v24  ;;  %vm131_vm11 = vcmask 523264  }
  0x14   :  { %140 = vmatpush.bf16.msra.mxu0 %v1180_v13  ;;  %v74_v22 = vsel %vm73_vm1, %v72_v20, 0.0  ;;  %235 = vmatpush.bf16.msra.mxu2 %v1180_v13  ;;  %v1205_v29 = vor.u32 %v974_v26, %v908_v27  ;;  %v64_v31 = vld [vmem:[%s1393_s1] sm:$0x3]  ;;  %s1128_s1 = smov 64   ;;  %v215_v27 = vsel %vm212_vm10, %v1188_v19, 0.0 }
  0x15   :  { %153 = vmatpush.bf16.msra.mxu1 %v1185_v14  ;;  %75 = vadd.xlane.f32.xlu0 %v74_v22  ;;  %v1239_v32 = vperm.slane %v64_v31, 0  ;;  %v1241_v34 = vperm.slane %v64_v31, 1  ;;  %v65_v35 = vld [vmem:[%s1395_s3] sm:$0x3] }
  0x16   :  { %248 = vmatpush.bf16.msra.mxu3 %v1185_v14  ;;  %v1247_v37 = vperm.slane %v65_v35, 0  ;;  %v1250_v39 = vperm.slane %v65_v35, 1 }
  0x18   :  { %141 = vmatpush.bf16.msra.mxu0 %v1192_v21  ;;  %236 = vmatpush.bf16.msra.mxu2 %v1192_v21 }
  0x19   :  { %154 = vmatpush.bf16.msra.mxu1 %v1197_v23 }
  0x1a   :  { %249 = vmatpush.bf16.msra.mxu3 %v1197_v23 }
  0x1c   :  { %142 = vmatpush.bf16.msra.mxu0 %v1201_v28  ;;  %237 = vmatpush.bf16.msra.mxu2 %v1201_v28 }
  0x1d   :  { %155 = vmatpush.bf16.msra.mxu1 %v1205_v29 }
  0x1e   :  { %250 = vmatpush.bf16.msra.mxu3 %v1205_v29 }
  0x1f   :  { %143 = vmatmul.bf16.vlgmr.msra.gmra.mxu0 %v1127_v30 }
  0x20   :  { %329 = vmatpush.bf16.msrb.mxu0 %v1175_v6  ;;  %156 = vmatmul.bf16.vlgmr.msra.gmra.mxu1 %v1127_v30  ;;  %v216_v30 = vsel %vm73_vm1, %v215_v27, 0.0 }
  0x21   :  { %342 = vmatpush.bf16.msrb.mxu1 %v1177_v10  ;;  %424 = vmatpush.bf16.msrb.mxu2 %v1175_v6 }
  0x22   :  { %437 = vmatpush.bf16.msrb.mxu3 %v1177_v10 }
  0x24   :  { %330 = vmatpush.bf16.msrb.mxu0 %v1180_v13 }
  0x25   :  { %343 = vmatpush.bf16.msrb.mxu1 %v1185_v14  ;;  %425 = vmatpush.bf16.msrb.mxu2 %v1180_v13 }
  0x26   :  { %438 = vmatpush.bf16.msrb.mxu3 %v1185_v14 }
  0x28   :  { %331 = vmatpush.bf16.msrb.mxu0 %v1192_v21 }
  0x29   :  { %344 = vmatpush.bf16.msrb.mxu1 %v1197_v23  ;;  %426 = vmatpush.bf16.msrb.mxu2 %v1192_v21 }
  0x2a   :  { %439 = vmatpush.bf16.msrb.mxu3 %v1197_v23 }
  0x2c   :  { %332 = vmatpush.bf16.msrb.mxu0 %v1201_v28 }
  0x2d   :  { %345 = vmatpush.bf16.msrb.mxu1 %v1205_v29  ;;  %427 = vmatpush.bf16.msrb.mxu2 %v1201_v28 }
  0x2e   :  { %440 = vmatpush.bf16.msrb.mxu3 %v1205_v29 }
  0x30   :  { %519 = vmatpush.bf16.msra.mxu0 %v1175_v6 }
  0x31   :  { %532 = vmatpush.bf16.msra.mxu1 %v1177_v10 }
  0x34   :  { %520 = vmatpush.bf16.msra.mxu0 %v1180_v13 }
  0x35   :  { %533 = vmatpush.bf16.msra.mxu1 %v1185_v14 }
  0x38   :  { %521 = vmatpush.bf16.msra.mxu0 %v1192_v21 }
  0x39   :  { %534 = vmatpush.bf16.msra.mxu1 %v1197_v23 }
  0x3c   :  { %522 = vmatpush.bf16.msra.mxu0 %v1201_v28 }
  0x3d   :  { %535 = vmatpush.bf16.msra.mxu1 %v1205_v29 }
  0x88   :  { %v76_v33 = vpop.xlane.xlu0 %75 }
  0x89   :  { %v82_v36 = vmul.f32 %v1239_v32, %v76_v33  ;;  %v83_v38 = vmul.f32 %v1241_v34, %v76_v33 }
  0x8b   :  { %v89_v40 = vadd.f32 %v1247_v37, %v82_v36  ;;  %v90_v41 = vadd.f32 %v1250_v39, %v83_v38 }
  0x9c   :  { %v144_v42 = vpop.f32.mrf.mxu0 }
  0x9d   :  { %v161_v43 = vadd.f32 %v144_v42, %v89_v40  ;;  %v157_v44 = vpop.f32.mrf.mxu1 }
  0x9e   :  { %v162_v45 = vadd.f32 %v157_v44, %v90_v41 }
  0x9f   :  { %v936_v46 = vmul.f32 -1.442695, %v161_v43 }
  0xa0   :  { %v937_v47 = vmul.f32 -1.442695, %v162_v45 }
  0xa1   :  { %990 = vpow2.f32 %v936_v46 }
  0xa2   :  { %992 = vpow2.f32 %v937_v47 }
  0xa4   :  { %v146_v48 = vpop.f32.mrf.mxu0 }
  0xa5   :  { %v159_v49 = vpop.f32.mrf.mxu1 }
  0xa7   :  { %v991_v50 = vpop.eup %990 }
  0xa8   :  { %v993_v51 = vpop.eup %992  ;;  %v169_v52 = vadd.f32 1.0, %v991_v50 }
  0xa9   :  { %v170_v53 = vadd.f32 1.0, %v993_v51 }
  0xaa   :  { %994 = vrcp.f32 %v169_v52  ;;  %v182_v3 = vand.u32 2147483648, %v169_v52  ;;  %vm176_vm6 = vweird.f32 %v169_v52  ;;  %v180_v5 = vand.u32 2147483647, %v169_v52 }
  0xab   :  { %996 = vrcp.f32 %v170_v53  ;;  %v197_v61 = vand.u32 2147483648, %v170_v53  ;;  %v195_v63 = vand.u32 2147483647, %v170_v53  ;;  %vm191_vm4 = vweird.f32 %v170_v53 }
  0xac   :  { %v183_v12 = vor.u32 1.1754944e-38, %v182_v3  ;;  %vm181_vm9 = vcmp.eq.f32.partialorder %v180_v5, 8.507059e+37 }
  0xad   :  { %v198_v4 = vor.u32 1.1754944e-38, %v197_v61  ;;  %vm196_vm7 = vcmp.eq.f32.partialorder %v195_v63, 8.507059e+37 }
  0xb0   :  { %v995_v54 = vpop.eup %994 }
  0xb1   :  { %v997_v55 = vpop.eup %996  ;;  %v172_v56 = vmul.f32 %v995_v54, %v169_v52  ;;  %vm177_vm3 = vweird.f32 %v995_v54 }
  0xb2   :  { %v187_v57 = vmul.f32 %v997_v55, %v170_v53  ;;  %vm192_vm2 = vweird.f32 %v997_v55  ;;  %vm178_vm8 = vmor %vm176_vm6, %vm177_vm3 }
  0xb3   :  { %v173_v58 = vsub.f32 1.0, %v172_v56  ;;  %vm193_vm5 = vmor %vm191_vm4, %vm192_vm2 }
  0xb4   :  { %v188_v59 = vsub.f32 1.0, %v187_v57 }
  0xb5   :  { %v174_v60 = vmul.f32 %v995_v54, %v173_v58 }
  0xb6   :  { %v189_v62 = vmul.f32 %v997_v55, %v188_v59 }
  0xb7   :  { %v175_v0 = vadd.f32 %v995_v54, %v174_v60 }
  0xb8   :  { %v190_v1 = vadd.f32 %v997_v55, %v189_v62 }
  0xb9   :  { %v179_v9 = vsel %vm178_vm8, %v995_v54, %v175_v0 }
  0xba   :  { %v194_v7 = vsel %vm193_vm5, %v997_v55, %v190_v1  ;;  %v184_v16 = vsel %vm181_vm9, %v183_v12, %v179_v9  ;;  %vm307_vm5 = vcmp.eq.s32.totalorder %v1173_v2, 2 }
  0xbb   :  { %v199_v8 = vsel %vm196_vm7, %v198_v4, %v194_v7  ;;  %v203_v18 = vmul.f32 0.0, %v184_v16  ;;  %v310_v27 = vsel %vm307_vm5, %v1188_v19, 0.0 }
  0xbc   :  { %v201_v11 = vmul.f32 2.0, %v199_v8 }
  0xbe   :  { %v938_v15 = vadd.f32 -1.0, %v201_v11 }
  0xc0   :  { %v204_v17 = vmul.f32 %v938_v15, %v184_v16 }
  0xc2   :  { %206 = vrot.lane.b32.xlu0 %v204_v17, %s1128_s1 }
 0x134   :  { %v207_v20 = vpop.permute.xlu0 %206 }
 0x135   :  { %v1255_v22 = vadd.f32 %v207_v20, %v203_v18 }
 0x137   :  { %998 = vtanh.f32 %v1255_v22 }
 0x13d   :  { %v999_v24 = vpop.eup %998 }
 0x13e   :  { %v211_v25 = vmul.f32 %v999_v24, %v199_v8 }
 0x140   :  { %v223_v26 = vpack.c.bf16 %v211_v25, %v211_v25 }
 0x142   :  { %225 = vrot.lane.b32.xlu1 %v223_v26, %s1128_s1 }
 0x16c   :  { %217 = vadd.xlane.f32.xlu1 %v216_v30  ;;  %v311_v30 = vsel %vm73_vm1, %v310_v27, 0.0 }
 0x1b4   :  { %v226_v31 = vpop.permute.xlu1 %225 }
 0x1b5   :  { %939 = vmatmul.msk.bf16.vlgmr.msra.gmra.mxu2 %vm131_vm11, %v226_v31  ;;  %940 = vmatmul.msk.bf16.vlgmr.msra.gmra.mxu3 %vm131_vm11, %v226_v31 }
 0x1b6   :  { %627 = vmatpush.bf16.msra.mxu3 %v1177_v10  ;;  %614 = vmatpush.bf16.msra.mxu2 %v1175_v6 }
 0x1ba   :  { %628 = vmatpush.bf16.msra.mxu3 %v1185_v14  ;;  %615 = vmatpush.bf16.msra.mxu2 %v1180_v13 }
 0x1be   :  { %629 = vmatpush.bf16.msra.mxu3 %v1197_v23  ;;  %616 = vmatpush.bf16.msra.mxu2 %v1192_v21 }
 0x1c2   :  { %630 = vmatpush.bf16.msra.mxu3 %v1205_v29  ;;  %617 = vmatpush.bf16.msra.mxu2 %v1201_v28 }
 0x1df   :  { %v218_v33 = vpop.xlane.xlu1 %217 }
 0x1e0   :  { %v219_v35 = vmul.f32 %v218_v33, %v1239_v32  ;;  %v220_v36 = vmul.f32 %v218_v33, %v1241_v34 }
 0x1e2   :  { %v221_v38 = vadd.f32 %v219_v35, %v1247_v37  ;;  %v222_v40 = vadd.f32 %v220_v36, %v1250_v39 }
 0x238   :  { %v239_v41 = vpop.f32.mrf.mxu2  ;;  %v252_v42 = vpop.f32.mrf.mxu3 }
 0x239   :  { %v256_v43 = vadd.f32 %v239_v41, %v221_v38  ;;  %v257_v44 = vadd.f32 %v252_v42, %v222_v40 }
 0x23b   :  { %v941_v45 = vmul.f32 -1.442695, %v256_v43  ;;  %v942_v46 = vmul.f32 -1.442695, %v257_v44 }
 0x23d   :  { %1000 = vpow2.f32 %v941_v45 }
 0x23e   :  { %1002 = vpow2.f32 %v942_v46 }
 0x240   :  { %v241_v47 = vpop.f32.mrf.mxu2  ;;  %v254_v48 = vpop.f32.mrf.mxu3 }
 0x243   :  { %v1001_v49 = vpop.eup %1000 }
 0x244   :  { %v1003_v50 = vpop.eup %1002  ;;  %v264_v51 = vadd.f32 1.0, %v1001_v49 }
 0x245   :  { %v265_v52 = vadd.f32 1.0, %v1003_v50 }
 0x246   :  { %1004 = vrcp.f32 %v264_v51  ;;  %v277_v1 = vand.u32 2147483648, %v264_v51  ;;  %vm271_vm0 = vweird.f32 %v264_v51  ;;  %v275_v4 = vand.u32 2147483647, %v264_v51 }
 0x247   :  { %1006 = vrcp.f32 %v265_v52  ;;  %v292_v60 = vand.u32 2147483648, %v265_v52  ;;  %v290_v62 = vand.u32 2147483647, %v265_v52  ;;  %vm286_vm14 = vweird.f32 %v265_v52 }
 0x248   :  { %v278_v11 = vor.u32 1.1754944e-38, %v277_v1  ;;  %vm276_vm4 = vcmp.eq.f32.partialorder %v275_v4, 8.507059e+37 }
 0x249   :  { %v293_v3 = vor.u32 1.1754944e-38, %v292_v60  ;;  %vm291_vm2 = vcmp.eq.f32.partialorder %v290_v62, 8.507059e+37 }
 0x24c   :  { %v1005_v53 = vpop.eup %1004 }
 0x24d   :  { %v1007_v54 = vpop.eup %1006  ;;  %v267_v55 = vmul.f32 %v1005_v53, %v264_v51  ;;  %vm272_vm13 = vweird.f32 %v1005_v53 }
 0x24e   :  { %v282_v56 = vmul.f32 %v1007_v54, %v265_v52  ;;  %vm287_vm12 = vweird.f32 %v1007_v54  ;;  %vm273_vm3 = vmor %vm271_vm0, %vm272_vm13 }
 0x24f   :  { %v268_v57 = vsub.f32 1.0, %v267_v55  ;;  %vm288_vm15 = vmor %vm286_vm14, %vm287_vm12 }
 0x250   :  { %v283_v58 = vsub.f32 1.0, %v282_v56 }
 0x251   :  { %v269_v59 = vmul.f32 %v1005_v53, %v268_v57 }
 0x252   :  { %v284_v61 = vmul.f32 %v1007_v54, %v283_v58 }
 0x253   :  { %v270_v63 = vadd.f32 %v1005_v53, %v269_v59 }
 0x254   :  { %v285_v0 = vadd.f32 %v1007_v54, %v284_v61 }
 0x255   :  { %v274_v8 = vsel %vm273_vm3, %v1005_v53, %v270_v63 }
 0x256   :  { %v289_v5 = vsel %vm288_vm15, %v1007_v54, %v285_v0  ;;  %v279_v15 = vsel %vm276_vm4, %v278_v11, %v274_v8  ;;  %vm402_vm15 = vcmp.eq.s32.totalorder %v1173_v2, 3 }
 0x257   :  { %v294_v7 = vsel %vm291_vm2, %v293_v3, %v289_v5  ;;  %v298_v17 = vmul.f32 %v279_v15, %v1255_v22  ;;  %v405_v27 = vsel %vm402_vm15, %v1188_v19, 0.0 }
 0x258   :  { %v296_v9 = vmul.f32 2.0, %v294_v7 }
 0x25a   :  { %v943_v12 = vadd.f32 -1.0, %v296_v9 }
 0x25c   :  { %v299_v16 = vmul.f32 %v943_v12, %v279_v15 }
 0x25e   :  { %301 = vrot.lane.b32.xlu2 %v299_v16, %s1128_s1 }
 0x2b8   :  { %v302_v18 = vpop.permute.xlu2 %301 }
 0x2b9   :  { %v1278_v20 = vadd.f32 %v302_v18, %v298_v17 }
 0x2bb   :  { %1008 = vtanh.f32 %v1278_v20 }
 0x2c1   :  { %v1009_v24 = vpop.eup %1008 }
 0x2c2   :  { %v306_v25 = vmul.f32 %v1009_v24, %v294_v7 }
 0x2c4   :  { %v318_v26 = vpack.c.bf16 %v306_v25, %v306_v25 }
 0x2c6   :  { %320 = vrot.lane.b32.xlu2 %v318_v26, %s1128_s1 }
 0x2ef   :  { %312 = vadd.xlane.f32.xlu2 %v311_v30  ;;  %v406_v30 = vsel %vm73_vm1, %v405_v27, 0.0 }
 0x320   :  { %v321_v31 = vpop.permute.xlu2 %320 }
 0x321   :  { %944 = vmatmul.msk.bf16.vlgmr.msrb.gmra.mxu0 %vm131_vm11, %v321_v31  ;;  %945 = vmatmul.msk.bf16.vlgmr.msrb.gmra.mxu1 %vm131_vm11, %v321_v31 }
 0x322   :  { %722 = vmatpush.bf16.msrb.mxu1 %v1177_v10  ;;  %709 = vmatpush.bf16.msrb.mxu0 %v1175_v6 }
 0x326   :  { %723 = vmatpush.bf16.msrb.mxu1 %v1185_v14  ;;  %710 = vmatpush.bf16.msrb.mxu0 %v1180_v13 }
 0x32a   :  { %724 = vmatpush.bf16.msrb.mxu1 %v1197_v23  ;;  %711 = vmatpush.bf16.msrb.mxu0 %v1192_v21 }
 0x32e   :  { %725 = vmatpush.bf16.msrb.mxu1 %v1205_v29  ;;  %712 = vmatpush.bf16.msrb.mxu0 %v1201_v28 }
 0x362   :  { %v313_v22 = vpop.xlane.xlu2 %312 }
 0x363   :  { %v314_v33 = vmul.f32 %v313_v22, %v1239_v32  ;;  %v315_v35 = vmul.f32 %v313_v22, %v1241_v34 }
 0x365   :  { %v316_v36 = vadd.f32 %v314_v33, %v1247_v37  ;;  %v317_v38 = vadd.f32 %v315_v35, %v1250_v39 }
 0x39e   :  { %v334_v40 = vpop.f32.mrf.mxu0  ;;  %v347_v41 = vpop.f32.mrf.mxu1 }
 0x39f   :  { %v351_v42 = vadd.f32 %v334_v40, %v316_v36  ;;  %v352_v43 = vadd.f32 %v347_v41, %v317_v38 }
 0x3a1   :  { %v946_v44 = vmul.f32 -1.442695, %v351_v42  ;;  %v947_v45 = vmul.f32 -1.442695, %v352_v43 }
 0x3a3   :  { %1010 = vpow2.f32 %v946_v44 }
 0x3a4   :  { %1012 = vpow2.f32 %v947_v45 }
 0x3a6   :  { %v336_v46 = vpop.f32.mrf.mxu0  ;;  %v349_v47 = vpop.f32.mrf.mxu1 }
 0x3a9   :  { %v1011_v48 = vpop.eup %1010 }
 0x3aa   :  { %v1013_v49 = vpop.eup %1012  ;;  %v359_v50 = vadd.f32 1.0, %v1011_v48 }
 0x3ab   :  { %v360_v51 = vadd.f32 1.0, %v1013_v49 }
 0x3ac   :  { %1014 = vrcp.f32 %v359_v50  ;;  %v372_v0 = vand.u32 2147483648, %v359_v50  ;;  %vm366_vm10 = vweird.f32 %v359_v50  ;;  %v370_v3 = vand.u32 2147483647, %v359_v50 }
 0x3ad   :  { %1016 = vrcp.f32 %v360_v51  ;;  %v387_v59 = vand.u32 2147483648, %v360_v51  ;;  %v385_v61 = vand.u32 2147483647, %v360_v51  ;;  %vm381_vm8 = vweird.f32 %v360_v51 }
 0x3ae   :  { %v373_v9 = vor.u32 1.1754944e-38, %v372_v0  ;;  %vm371_vm14 = vcmp.eq.f32.partialorder %v370_v3, 8.507059e+37 }
 0x3af   :  { %v388_v1 = vor.u32 1.1754944e-38, %v387_v59  ;;  %vm386_vm12 = vcmp.eq.f32.partialorder %v385_v61, 8.507059e+37 }
 0x3b2   :  { %v1015_v52 = vpop.eup %1014 }
 0x3b3   :  { %v1017_v53 = vpop.eup %1016  ;;  %v362_v54 = vmul.f32 %v1015_v52, %v359_v50  ;;  %vm367_vm7 = vweird.f32 %v1015_v52 }
 0x3b4   :  { %v377_v55 = vmul.f32 %v1017_v53, %v360_v51  ;;  %vm382_vm6 = vweird.f32 %v1017_v53  ;;  %vm368_vm13 = vmor %vm366_vm10, %vm367_vm7 }
 0x3b5   :  { %v363_v56 = vsub.f32 1.0, %v362_v54  ;;  %vm383_vm9 = vmor %vm381_vm8, %vm382_vm6 }
 0x3b6   :  { %v378_v57 = vsub.f32 1.0, %v377_v55 }
 0x3b7   :  { %v364_v58 = vmul.f32 %v1015_v52, %v363_v56 }
 0x3b8   :  { %v379_v60 = vmul.f32 %v1017_v53, %v378_v57 }
 0x3b9   :  { %v365_v62 = vadd.f32 %v1015_v52, %v364_v58 }
 0x3ba   :  { %v380_v63 = vadd.f32 %v1017_v53, %v379_v60 }
 0x3bb   :  { %v369_v7 = vsel %vm368_vm13, %v1015_v52, %v365_v62 }
 0x3bc   :  { %v384_v4 = vsel %vm383_vm9, %v1017_v53, %v380_v63  ;;  %v374_v12 = vsel %vm371_vm14, %v373_v9, %v369_v7  ;;  %vm497_vm9 = vcmp.eq.s32.totalorder %v1173_v2, 4 }
 0x3bd   :  { %v389_v5 = vsel %vm386_vm12, %v388_v1, %v384_v4  ;;  %v393_v16 = vmul.f32 %v374_v12, %v1278_v20 }
 0x3be   :  { %v391_v8 = vmul.f32 2.0, %v389_v5 }
 0x3c0   :  { %v948_v11 = vadd.f32 -1.0, %v391_v8 }
 0x3c2   :  { %v394_v15 = vmul.f32 %v948_v11, %v374_v12  ;;  %v500_v11 = vsel %vm497_vm9, %v1188_v19, 0.0 }
 0x3c3   :  { %v501_v12 = vsel %vm73_vm1, %v500_v11, 0.0 }
 0x3c4   :  { %396 = vrot.lane.b32.xlu0 %v394_v15, %s1128_s1 }
 0x436   :  { %v397_v17 = vpop.permute.xlu0 %396 }
 0x437   :  { %v1301_v18 = vadd.f32 %v397_v17, %v393_v16 }
 0x439   :  { %1018 = vtanh.f32 %v1301_v18 }
 0x43f   :  { %v1019_v24 = vpop.eup %1018 }
 0x440   :  { %v401_v25 = vmul.f32 %v1019_v24, %v389_v5 }
 0x442   :  { %v413_v26 = vpack.c.bf16 %v401_v25, %v401_v25 }
 0x444   :  { %415 = vrot.lane.b32.xlu0 %v413_v26, %s1128_s1 }
 0x46e   :  { %407 = vadd.xlane.f32.xlu0 %v406_v30 }
 0x4b6   :  { %v416_v31 = vpop.permute.xlu0 %415 }
 0x4b7   :  { %949 = vmatmul.msk.bf16.vlgmr.msrb.gmra.mxu2 %vm131_vm11, %v416_v31  ;;  %950 = vmatmul.msk.bf16.vlgmr.msrb.gmra.mxu3 %vm131_vm11, %v416_v31 }
 0x4b8   :  { %817 = vmatpush.bf16.msrb.mxu3 %v1177_v10  ;;  %804 = vmatpush.bf16.msrb.mxu2 %v1175_v6 }
 0x4bc   :  { %818 = vmatpush.bf16.msrb.mxu3 %v1185_v14  ;;  %805 = vmatpush.bf16.msrb.mxu2 %v1180_v13 }
 0x4c0   :  { %819 = vmatpush.bf16.msrb.mxu3 %v1197_v23  ;;  %806 = vmatpush.bf16.msrb.mxu2 %v1192_v21 }
 0x4c4   :  { %820 = vmatpush.bf16.msrb.mxu3 %v1205_v29  ;;  %807 = vmatpush.bf16.msrb.mxu2 %v1201_v28 }
 0x4e1   :  { %v408_v20 = vpop.xlane.xlu0 %407 }
 0x4e2   :  { %v409_v22 = vmul.f32 %v408_v20, %v1239_v32  ;;  %v410_v33 = vmul.f32 %v408_v20, %v1241_v34 }
 0x4e4   :  { %v411_v10 = vadd.f32 %v409_v22, %v1247_v37  ;;  %v412_v6 = vadd.f32 %v410_v33, %v1250_v39 }
 0x53a   :  { %v429_v14 = vpop.f32.mrf.mxu2  ;;  %v442_v35 = vpop.f32.mrf.mxu3 }
 0x53b   :  { %v446_v13 = vadd.f32 %v429_v14, %v411_v10  ;;  %v447_v36 = vadd.f32 %v442_v35, %v412_v6 }
 0x53d   :  { %v951_v23 = vmul.f32 -1.442695, %v446_v13  ;;  %v952_v38 = vmul.f32 -1.442695, %v447_v36 }
 0x53f   :  { %1020 = vpow2.f32 %v951_v23 }
 0x540   :  { %1022 = vpow2.f32 %v952_v38 }
 0x542   :  { %v431_v21 = vpop.f32.mrf.mxu2  ;;  %v444_v29 = vpop.f32.mrf.mxu3 }
 0x545   :  { %v1021_v28 = vpop.eup %1020 }
 0x546   :  { %v1023_v40 = vpop.eup %1022  ;;  %v454_v41 = vadd.f32 1.0, %v1021_v28 }
 0x547   :  { %v455_v42 = vadd.f32 1.0, %v1023_v40 }
 0x548   :  { %1024 = vrcp.f32 %v454_v41  ;;  %v467_v55 = vand.u32 2147483648, %v454_v41  ;;  %vm461_vm5 = vweird.f32 %v454_v41  ;;  %v465_v57 = vand.u32 2147483647, %v454_v41 }
 0x549   :  { %1026 = vrcp.f32 %v455_v42  ;;  %v482_v50 = vand.u32 2147483648, %v455_v42  ;;  %v480_v52 = vand.u32 2147483647, %v455_v42  ;;  %vm476_vm3 = vweird.f32 %v455_v42 }
 0x54a   :  { %v468_v62 = vor.u32 1.1754944e-38, %v467_v55  ;;  %vm466_vm8 = vcmp.eq.f32.partialorder %v465_v57, 8.507059e+37 }
 0x54b   :  { %v483_v56 = vor.u32 1.1754944e-38, %v482_v50  ;;  %vm481_vm6 = vcmp.eq.f32.partialorder %v480_v52, 8.507059e+37 }
 0x54e   :  { %v1025_v43 = vpop.eup %1024 }
 0x54f   :  { %v1027_v44 = vpop.eup %1026  ;;  %v457_v45 = vmul.f32 %v1025_v43, %v454_v41  ;;  %vm462_vm2 = vweird.f32 %v1025_v43 }
 0x550   :  { %v472_v46 = vmul.f32 %v1027_v44, %v455_v42  ;;  %vm477_vm0 = vweird.f32 %v1027_v44  ;;  %vm463_vm7 = vmor %vm461_vm5, %vm462_vm2 }
 0x551   :  { %v458_v47 = vsub.f32 1.0, %v457_v45  ;;  %vm478_vm4 = vmor %vm476_vm3, %vm477_vm0 }
 0x552   :  { %v473_v48 = vsub.f32 1.0, %v472_v46 }
 0x553   :  { %v459_v49 = vmul.f32 %v1025_v43, %v458_v47 }
 0x554   :  { %v474_v51 = vmul.f32 %v1027_v44, %v473_v48 }
 0x555   :  { %v460_v53 = vadd.f32 %v1025_v43, %v459_v49 }
 0x556   :  { %v475_v54 = vadd.f32 %v1027_v44, %v474_v51 }
 0x557   :  { %v464_v60 = vsel %vm463_vm7, %v1025_v43, %v460_v53 }
 0x558   :  { %v479_v58 = vsel %vm478_vm4, %v1027_v44, %v475_v54  ;;  %v469_v0 = vsel %vm466_vm8, %v468_v62, %v464_v60  ;;  %vm592_vm4 = vcmp.eq.s32.totalorder %v1173_v2, 5 }
 0x559   :  { %v484_v59 = vsel %vm481_vm6, %v483_v56, %v479_v58  ;;  %v488_v3 = vmul.f32 %v469_v0, %v1301_v18 }
 0x55a   :  { %v486_v61 = vmul.f32 2.0, %v484_v59 }
 0x55c   :  { %v953_v63 = vadd.f32 -1.0, %v486_v61 }
 0x55e   :  { %v489_v1 = vmul.f32 %v953_v63, %v469_v0  ;;  %v595_v63 = vsel %vm592_vm4, %v1188_v19, 0.0 }
 0x55f   :  { %v596_v0 = vsel %vm73_vm1, %v595_v63, 0.0 }
 0x560   :  { %491 = vrot.lane.b32.xlu1 %v489_v1, %s1128_s1 }
 0x58a   :  { %502 = vadd.xlane.f32.xlu1 %v501_v12 }
 0x5d2   :  { %v492_v4 = vpop.permute.xlu1 %491 }
 0x5d3   :  { %v1324_v5 = vadd.f32 %v492_v4, %v488_v3 }
 0x5d5   :  { %1028 = vtanh.f32 %v1324_v5 }
 0x5db   :  { %v1029_v7 = vpop.eup %1028 }
 0x5dc   :  { %v496_v8 = vmul.f32 %v1029_v7, %v484_v59 }
 0x5de   :  { %v508_v9 = vpack.c.bf16 %v496_v8, %v496_v8 }
 0x5e0   :  { %510 = vrot.lane.b32.xlu2 %v508_v9, %s1128_s1 }
 0x5fd   :  { %v503_v16 = vpop.xlane.xlu1 %502 }
 0x5fe   :  { %v504_v17 = vmul.f32 %v503_v16, %v1239_v32  ;;  %v505_v18 = vmul.f32 %v503_v16, %v1241_v34 }
 0x600   :  { %v506_v24 = vadd.f32 %v504_v17, %v1247_v37  ;;  %v507_v25 = vadd.f32 %v505_v18, %v1250_v39 }
 0x63a   :  { %v511_v15 = vpop.permute.xlu2 %510 }
 0x63b   :  { %954 = vmatmul.msk.bf16.vlgmr.msra.gmra.mxu0 %vm131_vm11, %v511_v15  ;;  %955 = vmatmul.msk.bf16.vlgmr.msra.gmra.mxu1 %vm131_vm11, %v511_v15 }
 0x6b8   :  { %v524_v26 = vpop.f32.mrf.mxu0  ;;  %v537_v27 = vpop.f32.mrf.mxu1 }
 0x6b9   :  { %v541_v30 = vadd.f32 %v524_v26, %v506_v24  ;;  %v542_v31 = vadd.f32 %v537_v27, %v507_v25 }
 0x6bb   :  { %v956_v20 = vmul.f32 -1.442695, %v541_v30  ;;  %v957_v22 = vmul.f32 -1.442695, %v542_v31 }
 0x6bd   :  { %1030 = vpow2.f32 %v956_v20 }
 0x6be   :  { %1032 = vpow2.f32 %v957_v22 }
 0x6c0   :  { %v526_v33 = vpop.f32.mrf.mxu0  ;;  %v539_v10 = vpop.f32.mrf.mxu1 }
 0x6c3   :  { %v1031_v6 = vpop.eup %1030 }
 0x6c4   :  { %v1033_v14 = vpop.eup %1032  ;;  %v549_v35 = vadd.f32 1.0, %v1031_v6 }
 0x6c5   :  { %v550_v13 = vadd.f32 1.0, %v1033_v14 }
 0x6c6   :  { %1034 = vrcp.f32 %v549_v35  ;;  %v562_v46 = vand.u32 2147483648, %v549_v35  ;;  %vm556_vm15 = vweird.f32 %v549_v35  ;;  %v560_v48 = vand.u32 2147483647, %v549_v35 }
 0x6c7   :  { %1036 = vrcp.f32 %v550_v13  ;;  %v577_v41 = vand.u32 2147483648, %v550_v13  ;;  %v575_v43 = vand.u32 2147483647, %v550_v13  ;;  %vm571_vm13 = vweird.f32 %v550_v13 }
 0x6c8   :  { %v563_v53 = vor.u32 1.1754944e-38, %v562_v46  ;;  %vm561_vm3 = vcmp.eq.f32.partialorder %v560_v48, 8.507059e+37 }
 0x6c9   :  { %v578_v47 = vor.u32 1.1754944e-38, %v577_v41  ;;  %vm576_vm0 = vcmp.eq.f32.partialorder %v575_v43, 8.507059e+37 }
 0x6cc   :  { %v1035_v36 = vpop.eup %1034 }
 0x6cd   :  { %v1037_v23 = vpop.eup %1036  ;;  %v552_v38 = vmul.f32 %v1035_v36, %v549_v35  ;;  %vm557_vm12 = vweird.f32 %v1035_v36 }
 0x6ce   :  { %v567_v21 = vmul.f32 %v1037_v23, %v550_v13  ;;  %vm572_vm10 = vweird.f32 %v1037_v23  ;;  %vm558_vm2 = vmor %vm556_vm15, %vm557_vm12 }
 0x6cf   :  { %v553_v29 = vsub.f32 1.0, %v552_v38  ;;  %vm573_vm14 = vmor %vm571_vm13, %vm572_vm10 }
 0x6d0   :  { %v568_v28 = vsub.f32 1.0, %v567_v21 }
 0x6d1   :  { %v554_v40 = vmul.f32 %v1035_v36, %v553_v29 }
 0x6d2   :  { %v569_v42 = vmul.f32 %v1037_v23, %v568_v28 }
 0x6d3   :  { %v555_v44 = vadd.f32 %v1035_v36, %v554_v40 }
 0x6d4   :  { %v570_v45 = vadd.f32 %v1037_v23, %v569_v42 }
 0x6d5   :  { %v559_v51 = vsel %vm558_vm2, %v1035_v36, %v555_v44 }
 0x6d6   :  { %v574_v49 = vsel %vm573_vm14, %v1037_v23, %v570_v45  ;;  %v564_v55 = vsel %vm561_vm3, %v563_v53, %v559_v51  ;;  %vm687_vm14 = vcmp.eq.s32.totalorder %v1173_v2, 6 }
 0x6d7   :  { %v579_v50 = vsel %vm576_vm0, %v578_v47, %v574_v49  ;;  %v583_v57 = vmul.f32 %v564_v55, %v1324_v5 }
 0x6d8   :  { %v581_v52 = vmul.f32 2.0, %v579_v50 }
 0x6da   :  { %v958_v54 = vadd.f32 -1.0, %v581_v52 }
 0x6dc   :  { %v584_v56 = vmul.f32 %v958_v54, %v564_v55  ;;  %v690_v54 = vsel %vm687_vm14, %v1188_v19, 0.0 }
 0x6dd   :  { %v691_v55 = vsel %vm73_vm1, %v690_v54, 0.0 }
 0x6de   :  { %586 = vrot.lane.b32.xlu2 %v584_v56, %s1128_s1  ;;  %692 = vadd.xlane.f32.xlu1 %v691_v55 }
 0x707   :  { %597 = vadd.xlane.f32.xlu2 %v596_v0 }
 0x738   :  { %v587_v58 = vpop.permute.xlu2 %586 }
 0x739   :  { %v1339_v59 = vadd.f32 %v587_v58, %v583_v57 }
 0x73b   :  { %1038 = vtanh.f32 %v1339_v59 }
 0x741   :  { %v1039_v60 = vpop.eup %1038 }
 0x742   :  { %v591_v61 = vmul.f32 %v1039_v60, %v579_v50 }
 0x744   :  { %v603_v62 = vpack.c.bf16 %v591_v61, %v591_v61 }
 0x746   :  { %605 = vrot.lane.b32.xlu0 %v603_v62, %s1128_s1 }
 0x751   :  { %v693_v57 = vpop.xlane.xlu1 %692 }
 0x752   :  { %v694_v58 = vmul.f32 %v693_v57, %v1239_v32 }
 0x754   :  { %v696_v60 = vadd.f32 %v694_v58, %v1247_v37 }
 0x77a   :  { %v598_v3 = vpop.xlane.xlu2 %597 }
 0x77b   :  { %v599_v4 = vmul.f32 %v598_v3, %v1239_v32  ;;  %v600_v5 = vmul.f32 %v598_v3, %v1241_v34 }
 0x77d   :  { %v601_v7 = vadd.f32 %v599_v4, %v1247_v37  ;;  %v602_v8 = vadd.f32 %v600_v5, %v1250_v39 }
 0x7b8   :  { %v606_v1 = vpop.permute.xlu0 %605 }
 0x7b9   :  { %959 = vmatmul.msk.bf16.vlgmr.msra.gmra.mxu2 %vm131_vm11, %v606_v1  ;;  %960 = vmatmul.msk.bf16.vlgmr.msra.gmra.mxu3 %vm131_vm11, %v606_v1 }
 0x83c   :  { %v619_v9 = vpop.f32.mrf.mxu2  ;;  %v632_v11 = vpop.f32.mrf.mxu3 }
 0x83d   :  { %v636_v12 = vadd.f32 %v619_v9, %v601_v7  ;;  %v637_v15 = vadd.f32 %v632_v11, %v602_v8 }
 0x83f   :  { %v961_v16 = vmul.f32 -1.442695, %v636_v12  ;;  %v962_v17 = vmul.f32 -1.442695, %v637_v15 }
 0x841   :  { %1040 = vpow2.f32 %v961_v16 }
 0x842   :  { %1042 = vpow2.f32 %v962_v17 }
 0x844   :  { %v621_v18 = vpop.f32.mrf.mxu2  ;;  %v634_v24 = vpop.f32.mrf.mxu3 }
 0x847   :  { %v1041_v25 = vpop.eup %1040 }
 0x848   :  { %v1043_v26 = vpop.eup %1042  ;;  %v644_v27 = vadd.f32 1.0, %v1041_v25 }
 0x849   :  { %v645_v30 = vadd.f32 1.0, %v1043_v26 }
 0x84a   :  { %1044 = vrcp.f32 %v644_v27  ;;  %v657_v21 = vand.u32 2147483648, %v644_v27  ;;  %vm651_vm9 = vweird.f32 %v644_v27  ;;  %v655_v28 = vand.u32 2147483647, %v644_v27 }
 0x84b   :  { %1046 = vrcp.f32 %v645_v30  ;;  %v672_v35 = vand.u32 2147483648, %v645_v30  ;;  %v670_v36 = vand.u32 2147483647, %v645_v30  ;;  %vm666_vm7 = vweird.f32 %v645_v30 }
 0x84c   :  { %v658_v44 = vor.u32 1.1754944e-38, %v657_v21  ;;  %vm656_vm13 = vcmp.eq.f32.partialorder %v655_v28, 8.507059e+37 }
 0x84d   :  { %v673_v29 = vor.u32 1.1754944e-38, %v672_v35  ;;  %vm671_vm10 = vcmp.eq.f32.partialorder %v670_v36, 8.507059e+37 }
 0x850   :  { %v1045_v31 = vpop.eup %1044 }
 0x851   :  { %v1047_v20 = vpop.eup %1046  ;;  %v647_v22 = vmul.f32 %v1045_v31, %v644_v27  ;;  %vm652_vm6 = vweird.f32 %v1045_v31 }
 0x852   :  { %v662_v33 = vmul.f32 %v1047_v20, %v645_v30  ;;  %vm667_vm5 = vweird.f32 %v1047_v20  ;;  %vm653_vm12 = vmor %vm651_vm9, %vm652_vm6 }
 0x853   :  { %v648_v10 = vsub.f32 1.0, %v647_v22  ;;  %vm668_vm8 = vmor %vm666_vm7, %vm667_vm5 }
 0x854   :  { %v663_v6 = vsub.f32 1.0, %v662_v33 }
 0x855   :  { %v649_v14 = vmul.f32 %v1045_v31, %v648_v10 }
 0x856   :  { %v664_v13 = vmul.f32 %v1047_v20, %v663_v6 }
 0x857   :  { %v650_v23 = vadd.f32 %v1045_v31, %v649_v14 }
 0x858   :  { %v665_v38 = vadd.f32 %v1047_v20, %v664_v13 }
 0x859   :  { %v654_v42 = vsel %vm653_vm12, %v1045_v31, %v650_v23 }
 0x85a   :  { %v669_v40 = vsel %vm668_vm8, %v1047_v20, %v665_v38  ;;  %v659_v46 = vsel %vm656_vm13, %v658_v44, %v654_v42  ;;  %vm782_vm8 = vcmp.eq.s32.totalorder %v1173_v2, 7  ;;  %v1070_v44 = vld [vmem:[#allocation3] sm:$0xff] }
 0x85b   :  { %v674_v41 = vsel %vm671_vm10, %v673_v29, %v669_v40  ;;  %v678_v48 = vmul.f32 %v659_v46, %v1339_v59  ;;  %v695_v59 = vmul.f32 %v693_v57, %v1241_v34 }
 0x85c   :  { %v676_v43 = vmul.f32 2.0, %v674_v41 }
 0x85d   :  { %v697_v61 = vadd.f32 %v695_v59, %v1250_v39 }
 0x85e   :  { %v963_v45 = vadd.f32 -1.0, %v676_v43 }
 0x860   :  { %v679_v47 = vmul.f32 %v963_v45, %v659_v46  ;;  %v785_v45 = vsel %vm782_vm8, %v1070_v44, 0.0 }
 0x861   :  { %v786_v46 = vsel %vm73_vm1, %v785_v45, 0.0 }
 0x862   :  { %681 = vrot.lane.b32.xlu0 %v679_v47, %s1128_s1 }
 0x8d4   :  { %v682_v49 = vpop.permute.xlu0 %681 }
 0x8d5   :  { %v1354_v50 = vadd.f32 %v682_v49, %v678_v48  ;;  %v988_v49 = vld [vmem:[%s1396_s4] ss:$0 sm:$0xff] }
 0x8d7   :  { %1048 = vtanh.f32 %v1354_v50 }
 0x8dd   :  { %v1049_v51 = vpop.eup %1048 }
 0x8de   :  { %v686_v52 = vmul.f32 %v1049_v51, %v674_v41 }
 0x8e0   :  { %v698_v53 = vpack.c.bf16 %v686_v52, %v686_v52 }
 0x8e2   :  { %700 = vrot.lane.b32.xlu0 %v698_v53, %s1128_s1 }
 0x954   :  { %v701_v56 = vpop.permute.xlu0 %700 }
 0x955   :  { %964 = vmatmul.msk.bf16.vlgmr.msrb.gmra.mxu0 %vm131_vm11, %v701_v56  ;;  %965 = vmatmul.msk.bf16.vlgmr.msrb.gmra.mxu1 %vm131_vm11, %v701_v56 }
 0x9d2   :  { %v714_v62 = vpop.f32.mrf.mxu0  ;;  %v727_v63 = vpop.f32.mrf.mxu1 }
 0x9d3   :  { %v731_v19 = vadd.f32 %v714_v62, %v696_v60  ;;  %v732_v0 = vadd.f32 %v727_v63, %v697_v61 }
 0x9d5   :  { %v966_v1 = vmul.f32 -1.442695, %v731_v19  ;;  %v967_v3 = vmul.f32 -1.442695, %v732_v0 }
 0x9d7   :  { %1050 = vpow2.f32 %v966_v1 }
 0x9d8   :  { %1052 = vpow2.f32 %v967_v3 }
 0x9da   :  { %v716_v4 = vpop.f32.mrf.mxu0  ;;  %v729_v5 = vpop.f32.mrf.mxu1 }
 0x9dd   :  { %v1051_v7 = vpop.eup %1050 }
 0x9de   :  { %v1053_v8 = vpop.eup %1052  ;;  %v739_v9 = vadd.f32 1.0, %v1051_v7 }
 0x9df   :  { %v740_v11 = vadd.f32 1.0, %v1053_v8 }
 0x9e0   :  { %1054 = vrcp.f32 %v739_v9  ;;  %v752_v22 = vand.u32 2147483648, %v739_v9  ;;  %vm746_vm4 = vweird.f32 %v739_v9  ;;  %v750_v10 = vand.u32 2147483647, %v739_v9 }
 0x9e1   :  { %1056 = vrcp.f32 %v740_v11  ;;  %v767_v26 = vand.u32 2147483648, %v740_v11  ;;  %v765_v30 = vand.u32 2147483647, %v740_v11  ;;  %vm761_vm2 = vweird.f32 %v740_v11 }
 0x9e2   :  { %v753_v36 = vor.u32 1.1754944e-38, %v752_v22  ;;  %vm751_vm7 = vcmp.eq.f32.partialorder %v750_v10, 8.507059e+37 }
 0x9e3   :  { %v768_v33 = vor.u32 1.1754944e-38, %v767_v26  ;;  %vm766_vm5 = vcmp.eq.f32.partialorder %v765_v30, 8.507059e+37 }
 0x9e6   :  { %v1055_v12 = vpop.eup %1054 }
 0x9e7   :  { %v1057_v15 = vpop.eup %1056  ;;  %v742_v16 = vmul.f32 %v1055_v12, %v739_v9  ;;  %vm747_vm0 = vweird.f32 %v1055_v12 }
 0x9e8   :  { %v757_v17 = vmul.f32 %v1057_v15, %v740_v11  ;;  %vm762_vm15 = vweird.f32 %v1057_v15  ;;  %vm748_vm6 = vmor %vm746_vm4, %vm747_vm0 }
 0x9e9   :  { %v743_v18 = vsub.f32 1.0, %v742_v16  ;;  %vm763_vm3 = vmor %vm761_vm2, %vm762_vm15  ;;  %vm896_vm2 = vcmask 7168  }
 0x9ea   :  { %v758_v24 = vsub.f32 1.0, %v757_v17 }
 0x9eb   :  { %v744_v25 = vmul.f32 %v1055_v12, %v743_v18 }
 0x9ec   :  { %v759_v27 = vmul.f32 %v1057_v15, %v758_v24 }
 0x9ed   :  { %v745_v31 = vadd.f32 %v1055_v12, %v744_v25 }
 0x9ee   :  { %v760_v20 = vadd.f32 %v1057_v15, %v759_v27 }
 0x9ef   :  { %v749_v35 = vsel %vm748_vm6, %v1055_v12, %v745_v31 }
 0x9f0   :  { %v764_v6 = vsel %vm763_vm3, %v1057_v15, %v760_v20  ;;  %v754_v38 = vsel %vm751_vm7, %v753_v36, %v749_v35  ;;  %v989_v36 = vld [vmem:[#allocation2] ss:$0 sm:$0xff] }
 0x9f1   :  { %v769_v14 = vsel %vm766_vm5, %v768_v33, %v764_v6  ;;  %v773_v29 = vmul.f32 %v754_v38, %v1354_v50 }
 0x9f2   :  { %v771_v13 = vmul.f32 2.0, %v769_v14 }
 0x9f4   :  { %v968_v23 = vadd.f32 -1.0, %v771_v13 }
 0x9f6   :  { %v774_v21 = vmul.f32 %v968_v23, %v754_v38 }
 0x9f8   :  { %776 = vrot.lane.b32.xlu0 %v774_v21, %s1128_s1 }
 0xa22   :  { %787 = vadd.xlane.f32.xlu0 %v786_v46 }
 0xa6a   :  { %v777_v28 = vpop.permute.xlu0 %776 }
 0xa6b   :  { %v1369_v40 = vadd.f32 %v777_v28, %v773_v29 }
 0xa6d   :  { %1058 = vtanh.f32 %v1369_v40 }
 0xa73   :  { %v1059_v41 = vpop.eup %1058 }
 0xa74   :  { %v781_v42 = vmul.f32 %v1059_v41, %v769_v14 }
 0xa76   :  { %v793_v43 = vpack.c.bf16 %v781_v42, %v781_v42 }
 0xa78   :  { %795 = vrot.lane.b32.xlu1 %v793_v43, %s1128_s1 }
 0xa80   :  { %880 = vrot.lane.b32.xlu1 %v988_v49, %s1128_s1 }
 0xa95   :  { %v788_v48 = vpop.xlane.xlu0 %787 }
 0xa96   :  { %v789_v50 = vmul.f32 %v788_v48, %v1239_v32  ;;  %v790_v51 = vmul.f32 %v788_v48, %v1241_v34 }
 0xa98   :  { %v791_v2 = vadd.f32 %v789_v50, %v1247_v37  ;;  %v792_v52 = vadd.f32 %v790_v51, %v1250_v39 }
 0xaea   :  { %v796_v47 = vpop.permute.xlu1 %795 }
 0xaeb   :  { %969 = vmatmul.msk.bf16.vlgmr.msrb.gmra.mxu2 %vm131_vm11, %v796_v47  ;;  %970 = vmatmul.msk.bf16.vlgmr.msrb.gmra.mxu3 %vm131_vm11, %v796_v47 }
 0xaf2   :  { %v881_v10 = vpop.permute.xlu1 %880 }
 0xb6e   :  { %v809_v53 = vpop.f32.mrf.mxu2  ;;  %v822_v54 = vpop.f32.mrf.mxu3 }
 0xb6f   :  { %v826_v55 = vadd.f32 %v809_v53, %v791_v2  ;;  %v827_v56 = vadd.f32 %v822_v54, %v792_v52 }
 0xb71   :  { %v971_v57 = vmul.f32 -1.442695, %v826_v55  ;;  %v972_v58 = vmul.f32 -1.442695, %v827_v56 }
 0xb73   :  { %1060 = vpow2.f32 %v971_v57 }
 0xb74   :  { %1062 = vpow2.f32 %v972_v58 }
 0xb76   :  { %v811_v59 = vpop.f32.mrf.mxu2  ;;  %v824_v60 = vpop.f32.mrf.mxu3 }
 0xb79   :  { %v1061_v61 = vpop.eup %1060 }
 0xb7a   :  { %v1063_v32 = vpop.eup %1062  ;;  %v834_v62 = vadd.f32 1.0, %v1061_v61 }
 0xb7b   :  { %v835_v34 = vadd.f32 1.0, %v1063_v32 }
 0xb7c   :  { %1064 = vrcp.f32 %v834_v62  ;;  %v847_v11 = vand.u32 2147483648, %v834_v62  ;;  %vm841_vm13 = vweird.f32 %v834_v62  ;;  %v845_v15 = vand.u32 2147483647, %v834_v62 }
 0xb7d   :  { %1066 = vrcp.f32 %v835_v34  ;;  %v862_v4 = vand.u32 2147483648, %v835_v34  ;;  %v860_v7 = vand.u32 2147483647, %v835_v34  ;;  %vm856_vm10 = vweird.f32 %v835_v34 }
 0xb7e   :  { %v848_v25 = vor.u32 1.1754944e-38, %v847_v11  ;;  %vm846_vm0 = vcmp.eq.f32.partialorder %v845_v15, 8.507059e+37 }
 0xb7f   :  { %v863_v12 = vor.u32 1.1754944e-38, %v862_v4  ;;  %vm861_vm14 = vcmp.eq.f32.partialorder %v860_v7, 8.507059e+37 }
 0xb82   :  { %v1065_v63 = vpop.eup %1064 }
 0xb83   :  { %v1067_v37 = vpop.eup %1066  ;;  %v837_v19 = vmul.f32 %v1065_v63, %v834_v62  ;;  %vm842_vm9 = vweird.f32 %v1065_v63 }
 0xb84   :  { %v852_v39 = vmul.f32 %v1067_v37, %v835_v34  ;;  %vm857_vm1 = vweird.f32 %v1067_v37  ;;  %vm843_vm15 = vmor %vm841_vm13, %vm842_vm9 }
 0xb85   :  { %v838_v0 = vsub.f32 1.0, %v837_v19  ;;  %vm858_vm12 = vmor %vm856_vm10, %vm857_vm1 }
 0xb86   :  { %v853_v1 = vsub.f32 1.0, %v852_v39 }
 0xb87   :  { %v839_v3 = vmul.f32 %v1065_v63, %v838_v0 }
 0xb88   :  { %v854_v5 = vmul.f32 %v1067_v37, %v853_v1 }
 0xb89   :  { %v840_v8 = vadd.f32 %v1065_v63, %v839_v3 }
 0xb8a   :  { %v855_v9 = vadd.f32 %v1067_v37, %v854_v5 }
 0xb8b   :  { %v844_v18 = vsel %vm843_vm15, %v1065_v63, %v840_v8 }
 0xb8c   :  { %v859_v16 = vsel %vm858_vm12, %v1067_v37, %v855_v9  ;;  %v849_v27 = vsel %vm846_vm0, %v848_v25, %v844_v18 }
 0xb8d   :  { %v864_v17 = vsel %vm861_vm14, %v863_v12, %v859_v16  ;;  %v868_v31 = vmul.f32 %v849_v27, %v1369_v40 }
 0xb8e   :  { %v866_v24 = vmul.f32 2.0, %v864_v17 }
 0xb90   :  { %v973_v26 = vadd.f32 -1.0, %v866_v24 }
 0xb92   :  { %v869_v30 = vmul.f32 %v973_v26, %v849_v27 }
 0xb94   :  { %871 = vrot.lane.b32.xlu2 %v869_v30, %s1128_s1 }
 0xbee   :  { %v872_v20 = vpop.permute.xlu2 %871 }
 0xbef   :  { %v874_v22 = vadd.f32 %v872_v20, %v868_v31 }
 0xbf1   :  { %1068 = vtanh.f32 %v874_v22 }
 0xbf7   :  { %v1069_v33 = vpop.eup %1068 }
 0xbf8   :  { %v876_v6 = vmul.f32 %v1069_v33, %v864_v17 }
 0xbfa   :  { %v883_v14 = vmul.f32 %v881_v10, %v876_v6 }
 0xbfc   :  { %885 = vrot.lane.b32.xlu2 %v883_v14, %s1128_s1 }
 0xc56   :  { %v886_v35 = vpop.permute.xlu2 %885 }
 0xc57   :  { %v888_v13 = vsel %vm131_vm11, %v886_v35, 0.0 }
 0xc58   :  { %889 = vadd.xlane.f32.xlu1 %v888_v13 }
 0xccb   :  { %v890_v23 = vpop.xlane.xlu1 %889 }
 0xccc   :  { %v895_v38 = vadd.f32 %v989_v36, %v890_v23 }
 0xcce   :  { %897 = vst.msk [vmem:[%s1398_s6] sm:$0xff] %vm896_vm2, %v895_v38 }
 0xccf   :  { %902 = vsyncpa [#allocation4], 1 }
 0xcd0   :  { %903 = vsyncpa [#allocation6], 1 }

</bundles_post_ra>
